<compile_context>
chip_gen: v7x
topology: tpu7x:2x2x1
jax: 0.10.0
libtpu: 0.0.40
codegen_flags: <defaults>
</compile_context>

<pallas_src>
import functools

import jax
import jax.numpy as jnp
from jax import lax
from jax.experimental import pallas as pl
from jax.experimental.pallas import tpu as pltpu

LANE = 128
SUBLANE = 8


def _round_up(n, m):
    return ((n + m - 1) // m) * m


def _sigmoid(x):
    # Exact identity sigmoid(x) = 0.5*(tanh(x/2)+1): transcendental stays on
    # the EUP slot, no divide on the VALU, no inf intermediates.
    return 0.5 * (jnp.tanh(0.5 * x) + 1.0)


def lstm_net_kernel(x_ref, wih_ref, whh_ref, b_ref, wfc_ref, bfc_ref,
                    out_ref, xproj_sc, hseq_sc, h_sc, c_sc,
                    *, chunk, batch_p, hidden):
    Bp, H = batch_p, hidden

    # ---- carry init (first time-chunk only) --------------------------------
    @pl.when(pl.program_id(0) == 0)
    def _():
        h_sc[...] = jnp.zeros_like(h_sc)
        c_sc[...] = jnp.zeros_like(c_sc)

    # ---- Phase 1: batched input projection for the whole chunk (+ bias) ----
    # x_ref: (chunk*Bp, Ip) bf16, wih_ref: (Ip, 4H) bf16, b_ref: (1, 4H) f32.
    xproj_sc[...] = (jnp.dot(x_ref[...], wih_ref[...],
                             preferred_element_type=jnp.float32)
                     + b_ref[...])

    # Packed bf16 W_hh is (H, 4H) = (32, 128) = 8 KiB (2 vregs): safe to hoist
    # out of the unrolled loop (unlike the previous 256 KiB f32 per-gate tile).
    whh = whh_ref[...]

    # ---- Phase 2: the recurrence (only serial part) -------------------------
    def step(t, carry):
        h_prev, c_prev = carry                        # (Bp, H) f32 each
        row = pl.multiple_of(t * Bp, Bp)
        gates = (xproj_sc[pl.ds(row, Bp), :]
                 + jnp.dot(h_prev.astype(jnp.bfloat16), whh,
                           preferred_element_type=jnp.float32))   # (Bp, 4H)
        # PyTorch gate order i, f, g, o; lane extraction rides the XLU slot.
        i_g = _sigmoid(gates[:, 0 * H:1 * H])
        f_g = _sigmoid(gates[:, 1 * H:2 * H])
        g_g = jnp.tanh(gates[:, 2 * H:3 * H])
        o_g = _sigmoid(gates[:, 3 * H:4 * H])
        c_new = f_g * c_prev + i_g * g_g
        h_new = o_g * jnp.tanh(c_new)
        hseq_sc[pl.ds(row, Bp), :] = h_new
        return h_new, c_new

    # Full unroll only over the bounded chunk (<= 32 steps).
    h_last, c_last = lax.fori_loop(0, chunk, step, (h_sc[...], c_sc[...]),
                                   unroll=True)
    h_sc[...] = h_last
    c_sc[...] = c_last

    # ---- Phase 3: batched fc1 + log_softmax, lane-dense (128) writeback -----
    # Padded action lanes carry a -1e30 bias: never win the max, exp() == 0.
    logits = (jnp.dot(hseq_sc[...].astype(jnp.bfloat16), wfc_ref[...],
                      preferred_element_type=jnp.float32)
              + bfc_ref[...])                                   # (chunk*Bp, Ap)
    m = jnp.max(logits, axis=-1, keepdims=True)
    shifted = logits - m
    lse = jnp.log(jnp.sum(jnp.exp(shifted), axis=-1, keepdims=True))
    out_ref[...] = (shifted - lse).astype(out_ref.dtype)


def network_forward(x, kparams, n_actions, *, chunk_steps=32):
    """x: (T, B, input_size) f32 -> (T, B, n_actions) f32 log-probabilities."""
    T_len, B, I = x.shape
    H, G = kparams["w_hh_t"].shape          # (hidden, 4*hidden) packed gates
    Ip = kparams["w_ih_t"].shape[0]         # lane-padded input features
    Ap = kparams["w_fc_t"].shape[1]         # lane-padded actions
    Bp = _round_up(B, SUBLANE)

    chunk = min(T_len, chunk_steps)
    T_pad = _round_up(T_len, chunk)
    n_chunks = T_pad // chunk

    # Pad batch to a sublane group, lane-pad features, flatten time into rows.
    x_p = jnp.zeros((T_pad, Bp, Ip), jnp.bfloat16)
    x_p = x_p.at[:T_len, :B, :I].set(x.astype(jnp.bfloat16))
    x2d = x_p.reshape(T_pad * Bp, Ip)

    kernel = functools.partial(lstm_net_kernel, chunk=chunk,
                               batch_p=Bp, hidden=H)

    flops = 2 * T_pad * Bp * (Ip * G + H * G + H * Ap)
    transcendentals = T_pad * Bp * (5 * H + Ap)
    bytes_accessed = (x2d.size * 2 + T_pad * Bp * Ap * 4
                      + (Ip * G + H * G + H * Ap) * 2 + (G + Ap) * 4)

    out2d = pl.pallas_call(
        kernel,
        out_shape=jax.ShapeDtypeStruct((T_pad * Bp, Ap), jnp.float32),
        grid=(n_chunks,),
        in_specs=[
            pl.BlockSpec((chunk * Bp, Ip), lambda i: (i, 0)),   # x (chunked)
            pl.BlockSpec((Ip, G), lambda i: (0, 0)),            # W_ih^T
            pl.BlockSpec((H, G), lambda i: (0, 0)),             # W_hh^T
            pl.BlockSpec((1, G), lambda i: (0, 0)),             # b_ih + b_hh
            pl.BlockSpec((H, Ap), lambda i: (0, 0)),            # W_fc^T
            pl.BlockSpec((1, Ap), lambda i: (0, 0)),            # b_fc (masked)
        ],
        out_specs=pl.BlockSpec((chunk * Bp, Ap), lambda i: (i, 0)),
        scratch_shapes=[
            pltpu.VMEM((chunk * Bp, G), jnp.float32),   # x @ W_ih + b (chunk)
            pltpu.VMEM((chunk * Bp, H), jnp.float32),   # stacked h_t (chunk)
            pltpu.VMEM((Bp, H), jnp.float32),           # h carry (persistent)
            pltpu.VMEM((Bp, H), jnp.float32),           # c carry (persistent)
        ],
        compiler_params=pltpu.CompilerParams(
            dimension_semantics=("arbitrary",),          # sequential carry
            vmem_limit_bytes=32 * 1024 * 1024),
        cost_estimate=pl.CostEstimate(flops=flops,
                                      transcendentals=transcendentals,
                                      bytes_accessed=bytes_accessed),
    )(x2d, kparams["w_ih_t"], kparams["w_hh_t"], kparams["b"],
      kparams["w_fc_t"], kparams["b_fc"])

    return out2d.reshape(T_pad, Bp, Ap)[:T_len, :B, :n_actions]


def make_raw_params(key, input_size, hidden, n_actions):
    """Deterministic synthetic weights matching nn.LSTMCell + nn.Linear shapes."""
    ks = jax.random.split(key, 6)
    scale = 1.0 / jnp.sqrt(hidden)
    u = lambda k, shape: jax.random.uniform(k, shape, jnp.float32, -scale, scale)
    return {
        "w_ih": u(ks[0], (4 * hidden, input_size)),
        "w_hh": u(ks[1], (4 * hidden, hidden)),
        "b_ih": u(ks[2], (4 * hidden,)),
        "b_hh": u(ks[3], (4 * hidden,)),
        "w_fc": u(ks[4], (n_actions, hidden)),
        "b_fc": u(ks[5], (n_actions,)),
    }


def pad_params(raw):
    """Transpose, lane-pad and bf16-cast weights for the kernel.

    Gates are packed contiguously (i|f|g|o) into a single 4*H-wide block
    (4*H == 128 here, so one 128-lane block).  Input features are lane-padded
    to 128 with zero weight rows; padded action lanes get a -1e30 bias so
    they drop out of the log_softmax.  Matmul weights are bf16, biases f32.
    """
    H = raw["w_hh"].shape[1]
    I = raw["w_ih"].shape[1]
    A = raw["w_fc"].shape[0]
    G = 4 * H
    Ip = _round_up(I, LANE)
    Ap = _round_up(A, LANE)

    b = (raw["b_ih"] + raw["b_hh"]).astype(jnp.float32).reshape(1, G)
    w_ih_t = (jnp.zeros((Ip, G), jnp.bfloat16)
              .at[:I, :].set(raw["w_ih"].T.astype(jnp.bfloat16)))     # (Ip, 4H)
    w_hh_t = raw["w_hh"].T.astype(jnp.bfloat16)                       # (H, 4H)
    w_fc_t = (jnp.zeros((H, Ap), jnp.bfloat16)
              .at[:, :A].set(raw["w_fc"].T.astype(jnp.bfloat16)))     # (H, Ap)
    b_fc = jnp.full((1, Ap), -1e30, jnp.float32).at[0, :A].set(raw["b_fc"])
    return {"w_ih_t": w_ih_t, "w_hh_t": w_hh_t, "b": b,
            "w_fc_t": w_fc_t, "b_fc": b_fc}


def reference_forward(x, raw):
    """Pure-JAX f32 reference of the PyTorch forward (correctness check)."""
    T_len, B, _ = x.shape
    H = raw["w_hh"].shape[1]
    w_ih_t, w_hh_t = raw["w_ih"].T, raw["w_hh"].T
    b = raw["b_ih"] + raw["b_hh"]
    h = jnp.zeros((B, H), jnp.float32)
    c = jnp.zeros((B, H), jnp.float32)
    outs = []
    for t in range(T_len):
        gates = x[t] @ w_ih_t + h @ w_hh_t + b
        i_g = jax.nn.sigmoid(gates[:, 0 * H:1 * H])
        f_g = jax.nn.sigmoid(gates[:, 1 * H:2 * H])
        g_g = jnp.tanh(gates[:, 2 * H:3 * H])
        o_g = jax.nn.sigmoid(gates[:, 3 * H:4 * H])
        c = f_g * c + i_g * g_g
        h = o_g * jnp.tanh(c)
        logits = h @ raw["w_fc"].T + raw["b_fc"]
        outs.append(jax.nn.log_softmax(logits, axis=1))
    return jnp.stack(outs, axis=0)


# TODO(synk): Adam optimizer / save_checkpoint / load_checkpoint are training
# and file-I/O concerns with no forward-pass Pallas equivalent; not implemented.

if __name__ == "__main__":
    # Small shapes consistent with the module: x is (seq, batch, input_size).
    T_LEN, B, INPUT_SIZE, HIDDEN, N_ACTIONS = 8, 4, 16, 32, 8

    key = jax.random.PRNGKey(0)
    kx, kp = jax.random.split(key)
    x = jax.random.normal(kx, (T_LEN, B, INPUT_SIZE), jnp.float32)

    raw = make_raw_params(kp, INPUT_SIZE, HIDDEN, N_ACTIONS)
    kparams = pad_params(raw)

    out = network_forward(x, kparams, N_ACTIONS)
    out = jax.block_until_ready(out)

    ref = reference_forward(x, raw)
    assert out.shape == (T_LEN, B, N_ACTIONS)
    # bf16 matmul weights vs. the f32 reference: relaxed tolerance.
    assert jnp.allclose(out, ref, atol=5e-2, rtol=5e-2), "mismatch vs reference"

    print("KERNEL_OK")
</pallas_src>

<mosaic_0001>
module attributes {stable_mosaic.version = 11 : i64} {
  func.func @lstm_net_kernel(%arg0: i32, %arg1: memref<64x128xbf16, #tpu.memory_space<vmem>>, %arg2: memref<128x128xbf16, #tpu.memory_space<vmem>>, %arg3: memref<32x128xbf16, #tpu.memory_space<vmem>>, %arg4: memref<1x128xf32, #tpu.memory_space<vmem>>, %arg5: memref<32x128xbf16, #tpu.memory_space<vmem>>, %arg6: memref<1x128xf32, #tpu.memory_space<vmem>>, %arg7: memref<64x128xf32, #tpu.memory_space<vmem>>, %arg8: memref<64x128xf32, #tpu.memory_space<vmem>>, %arg9: memref<64x32xf32, #tpu.memory_space<vmem>>, %arg10: memref<8x32xf32, #tpu.memory_space<vmem>>, %arg11: memref<8x32xf32, #tpu.memory_space<vmem>>) attributes {dimension_semantics = [#tpu.dimension_semantics<arbitrary>], iteration_bounds = array<i64: 1>, scalar_prefetch = 0 : i64, scratch_operands = 4 : i64, tpu.core_type = #tpu.core_type<tc>, window_params = [{transform_indices = @transform_0, window_bounds = array<i64: 64, 128>}, {pipeline_mode = #tpu.pipeline_mode<synchronous>, transform_indices = @transform_1, window_bounds = array<i64: 128, 128>}, {pipeline_mode = #tpu.pipeline_mode<synchronous>, transform_indices = @transform_2, window_bounds = array<i64: 32, 128>}, {pipeline_mode = #tpu.pipeline_mode<synchronous>, transform_indices = @transform_3, window_bounds = array<i64: 1, 128>}, {pipeline_mode = #tpu.pipeline_mode<synchronous>, transform_indices = @transform_4, window_bounds = array<i64: 32, 128>}, {pipeline_mode = #tpu.pipeline_mode<synchronous>, transform_indices = @transform_5, window_bounds = array<i64: 1, 128>}, {transform_indices = @transform_6, window_bounds = array<i64: 64, 128>}]} {
    %c0_i32 = arith.constant 0 : i32
    %0 = arith.cmpi eq, %arg0, %c0_i32 : i32
    %1 = arith.extui %0 : i1 to i32
    %c0_i32_0 = arith.constant 0 : i32
    %2 = arith.cmpi ne, %1, %c0_i32_0 : i32
    scf.if %2 {
      %cst_134 = arith.constant 0.000000e+00 : f32
      %353 = vector.broadcast %cst_134 : f32 to vector<8x32xf32>
      %c0_135 = arith.constant 0 : index
      %c0_136 = arith.constant 0 : index
      %354 = vector.load %arg10[%c0_135, %c0_136] : memref<8x32xf32, #tpu.memory_space<vmem>>, vector<8x32xf32>
      tpu.vector_store %arg10[%c0_135, %c0_136], %353 {strides = array<i32>} : memref<8x32xf32, #tpu.memory_space<vmem>>, vector<8x32xf32>,
      %cst_137 = arith.constant 0.000000e+00 : f32
      %355 = vector.broadcast %cst_137 : f32 to vector<8x32xf32>
      %c0_138 = arith.constant 0 : index
      %c0_139 = arith.constant 0 : index
      %356 = vector.load %arg11[%c0_138, %c0_139] : memref<8x32xf32, #tpu.memory_space<vmem>>, vector<8x32xf32>
      tpu.vector_store %arg11[%c0_138, %c0_139], %355 {strides = array<i32>} : memref<8x32xf32, #tpu.memory_space<vmem>>, vector<8x32xf32>,
    } else {
    }
    %c0 = arith.constant 0 : index
    %c0_1 = arith.constant 0 : index
    %3 = vector.load %arg1[%c0, %c0_1] : memref<64x128xbf16, #tpu.memory_space<vmem>>, vector<64x128xbf16>
    %c0_2 = arith.constant 0 : index
    %c0_3 = arith.constant 0 : index
    %4 = vector.load %arg2[%c0_2, %c0_3] : memref<128x128xbf16, #tpu.memory_space<vmem>>, vector<128x128xbf16>
    %cst = arith.constant dense<0.000000e+00> : vector<64x128xf32>
    %5 = tpu.matmul %3, %4, %cst {dimension_numbers = #tpu.dot_dimension_numbers<[1], [0], [0], [1], [0, 0, 1, 1], [], []>} : vector<64x128xbf16>, vector<128x128xbf16>, vector<64x128xf32> -> vector<64x128xf32>
    %c0_4 = arith.constant 0 : index
    %c0_5 = arith.constant 0 : index
    %6 = vector.load %arg4[%c0_4, %c0_5] : memref<1x128xf32, #tpu.memory_space<vmem>>, vector<1x128xf32>
    %7 = vector.broadcast %6 : vector<1x128xf32> to vector<64x128xf32>
    %8 = arith.addf %5, %7 : vector<64x128xf32>
    %c0_6 = arith.constant 0 : index
    %c0_7 = arith.constant 0 : index
    %9 = vector.load %arg8[%c0_6, %c0_7] : memref<64x128xf32, #tpu.memory_space<vmem>>, vector<64x128xf32>
    tpu.vector_store %arg8[%c0_6, %c0_7], %8 {strides = array<i32>} : memref<64x128xf32, #tpu.memory_space<vmem>>, vector<64x128xf32>,
    %c0_8 = arith.constant 0 : index
    %c0_9 = arith.constant 0 : index
    %10 = vector.load %arg3[%c0_8, %c0_9] : memref<32x128xbf16, #tpu.memory_space<vmem>>, vector<32x128xbf16>
    %c0_10 = arith.constant 0 : index
    %c0_11 = arith.constant 0 : index
    %11 = vector.load %arg10[%c0_10, %c0_11] : memref<8x32xf32, #tpu.memory_space<vmem>>, vector<8x32xf32>
    %c0_12 = arith.constant 0 : index
    %c0_13 = arith.constant 0 : index
    %12 = vector.load %arg11[%c0_12, %c0_13] : memref<8x32xf32, #tpu.memory_space<vmem>>, vector<8x32xf32>
    %c0_i32_14 = arith.constant 0 : i32
    %c8_i32 = arith.constant 8 : i32
    %13 = arith.muli %c0_i32_14, %c8_i32 : i32
    %14 = tpu.assume_multiple %13, 8 : i32
    %15 = arith.index_cast %14 : i32 to index
    %c0_15 = arith.constant 0 : index
    %16 = vector.load %arg8[%15, %c0_15] : memref<64x128xf32, #tpu.memory_space<vmem>>, vector<8x128xf32>
    %17 = arith.truncf %11 : vector<8x32xf32> to vector<8x32xbf16>
    %cst_16 = arith.constant dense<0.000000e+00> : vector<8x128xf32>
    %18 = tpu.matmul %17, %10, %cst_16 {dimension_numbers = #tpu.dot_dimension_numbers<[1], [0], [0], [1], [0, 0, 1, 1], [], []>} : vector<8x32xbf16>, vector<32x128xbf16>, vector<8x128xf32> -> vector<8x128xf32>
    %19 = arith.addf %16, %18 : vector<8x128xf32>
    %20 = vector.extract_strided_slice %19 {offsets = [0, 0], sizes = [8, 32], strides = [1, 1]} : vector<8x128xf32> to vector<8x32xf32>
    %cst_17 = arith.constant 5.000000e-01 : f32
    %21 = vector.broadcast %cst_17 : f32 to vector<8x32xf32>
    %22 = arith.mulf %21, %20 : vector<8x32xf32>
    %23 = math.tanh %22 : vector<8x32xf32>
    %cst_18 = arith.constant 1.000000e+00 : f32
    %24 = vector.broadcast %cst_18 : f32 to vector<8x32xf32>
    %25 = arith.addf %23, %24 : vector<8x32xf32>
    %cst_19 = arith.constant 5.000000e-01 : f32
    %26 = vector.broadcast %cst_19 : f32 to vector<8x32xf32>
    %27 = arith.mulf %26, %25 : vector<8x32xf32>
    %28 = vector.extract_strided_slice %19 {offsets = [0, 32], sizes = [8, 32], strides = [1, 1]} : vector<8x128xf32> to vector<8x32xf32>
    %cst_20 = arith.constant 5.000000e-01 : f32
    %29 = vector.broadcast %cst_20 : f32 to vector<8x32xf32>
    %30 = arith.mulf %29, %28 : vector<8x32xf32>
    %31 = math.tanh %30 : vector<8x32xf32>
    %cst_21 = arith.constant 1.000000e+00 : f32
    %32 = vector.broadcast %cst_21 : f32 to vector<8x32xf32>
    %33 = arith.addf %31, %32 : vector<8x32xf32>
    %cst_22 = arith.constant 5.000000e-01 : f32
    %34 = vector.broadcast %cst_22 : f32 to vector<8x32xf32>
    %35 = arith.mulf %34, %33 : vector<8x32xf32>
    %36 = vector.extract_strided_slice %19 {offsets = [0, 64], sizes = [8, 32], strides = [1, 1]} : vector<8x128xf32> to vector<8x32xf32>
    %37 = math.tanh %36 : vector<8x32xf32>
    %38 = vector.extract_strided_slice %19 {offsets = [0, 96], sizes = [8, 32], strides = [1, 1]} : vector<8x128xf32> to vector<8x32xf32>
    %cst_23 = arith.constant 5.000000e-01 : f32
    %39 = vector.broadcast %cst_23 : f32 to vector<8x32xf32>
    %40 = arith.mulf %39, %38 : vector<8x32xf32>
    %41 = math.tanh %40 : vector<8x32xf32>
    %cst_24 = arith.constant 1.000000e+00 : f32
    %42 = vector.broadcast %cst_24 : f32 to vector<8x32xf32>
    %43 = arith.addf %41, %42 : vector<8x32xf32>
    %cst_25 = arith.constant 5.000000e-01 : f32
    %44 = vector.broadcast %cst_25 : f32 to vector<8x32xf32>
    %45 = arith.mulf %44, %43 : vector<8x32xf32>
    %46 = arith.mulf %35, %12 : vector<8x32xf32>
    %47 = arith.mulf %27, %37 : vector<8x32xf32>
    %48 = arith.addf %46, %47 : vector<8x32xf32>
    %49 = math.tanh %48 : vector<8x32xf32>
    %50 = arith.mulf %45, %49 : vector<8x32xf32>
    %51 = arith.index_cast %14 : i32 to index
    %c0_26 = arith.constant 0 : index
    %52 = vector.load %arg9[%51, %c0_26] : memref<64x32xf32, #tpu.memory_space<vmem>>, vector<8x32xf32>
    tpu.vector_store %arg9[%51, %c0_26], %50 {strides = array<i32>} : memref<64x32xf32, #tpu.memory_space<vmem>>, vector<8x32xf32>,
    %c1_i32 = arith.constant 1 : i32
    %c8_i32_27 = arith.constant 8 : i32
    %53 = arith.muli %c1_i32, %c8_i32_27 : i32
    %54 = tpu.assume_multiple %53, 8 : i32
    %55 = arith.index_cast %54 : i32 to index
    %c0_28 = arith.constant 0 : index
    %56 = vector.load %arg8[%55, %c0_28] : memref<64x128xf32, #tpu.memory_space<vmem>>, vector<8x128xf32>
    %57 = arith.truncf %50 : vector<8x32xf32> to vector<8x32xbf16>
    %cst_29 = arith.constant dense<0.000000e+00> : vector<8x128xf32>
    %58 = tpu.matmul %57, %10, %cst_29 {dimension_numbers = #tpu.dot_dimension_numbers<[1], [0], [0], [1], [0, 0, 1, 1], [], []>} : vector<8x32xbf16>, vector<32x128xbf16>, vector<8x128xf32> -> vector<8x128xf32>
    %59 = arith.addf %56, %58 : vector<8x128xf32>
    %60 = vector.extract_strided_slice %59 {offsets = [0, 0], sizes = [8, 32], strides = [1, 1]} : vector<8x128xf32> to vector<8x32xf32>
    %cst_30 = arith.constant 5.000000e-01 : f32
    %61 = vector.broadcast %cst_30 : f32 to vector<8x32xf32>
    %62 = arith.mulf %61, %60 : vector<8x32xf32>
    %63 = math.tanh %62 : vector<8x32xf32>
    %cst_31 = arith.constant 1.000000e+00 : f32
    %64 = vector.broadcast %cst_31 : f32 to vector<8x32xf32>
    %65 = arith.addf %63, %64 : vector<8x32xf32>
    %cst_32 = arith.constant 5.000000e-01 : f32
    %66 = vector.broadcast %cst_32 : f32 to vector<8x32xf32>
    %67 = arith.mulf %66, %65 : vector<8x32xf32>
    %68 = vector.extract_strided_slice %59 {offsets = [0, 32], sizes = [8, 32], strides = [1, 1]} : vector<8x128xf32> to vector<8x32xf32>
    %cst_33 = arith.constant 5.000000e-01 : f32
    %69 = vector.broadcast %cst_33 : f32 to vector<8x32xf32>
    %70 = arith.mulf %69, %68 : vector<8x32xf32>
    %71 = math.tanh %70 : vector<8x32xf32>
    %cst_34 = arith.constant 1.000000e+00 : f32
    %72 = vector.broadcast %cst_34 : f32 to vector<8x32xf32>
    %73 = arith.addf %71, %72 : vector<8x32xf32>
    %cst_35 = arith.constant 5.000000e-01 : f32
    %74 = vector.broadcast %cst_35 : f32 to vector<8x32xf32>
    %75 = arith.mulf %74, %73 : vector<8x32xf32>
    %76 = vector.extract_strided_slice %59 {offsets = [0, 64], sizes = [8, 32], strides = [1, 1]} : vector<8x128xf32> to vector<8x32xf32>
    %77 = math.tanh %76 : vector<8x32xf32>
    %78 = vector.extract_strided_slice %59 {offsets = [0, 96], sizes = [8, 32], strides = [1, 1]} : vector<8x128xf32> to vector<8x32xf32>
    %cst_36 = arith.constant 5.000000e-01 : f32
    %79 = vector.broadcast %cst_36 : f32 to vector<8x32xf32>
    %80 = arith.mulf %79, %78 : vector<8x32xf32>
    %81 = math.tanh %80 : vector<8x32xf32>
    %cst_37 = arith.constant 1.000000e+00 : f32
    %82 = vector.broadcast %cst_37 : f32 to vector<8x32xf32>
    %83 = arith.addf %81, %82 : vector<8x32xf32>
    %cst_38 = arith.constant 5.000000e-01 : f32
    %84 = vector.broadcast %cst_38 : f32 to vector<8x32xf32>
    %85 = arith.mulf %84, %83 : vector<8x32xf32>
    %86 = arith.mulf %75, %48 : vector<8x32xf32>
    %87 = arith.mulf %67, %77 : vector<8x32xf32>
    %88 = arith.addf %86, %87 : vector<8x32xf32>
    %89 = math.tanh %88 : vector<8x32xf32>
    %90 = arith.mulf %85, %89 : vector<8x32xf32>
    %91 = arith.index_cast %54 : i32 to index
    %c0_39 = arith.constant 0 : index
    %92 = vector.load %arg9[%91, %c0_39] : memref<64x32xf32, #tpu.memory_space<vmem>>, vector<8x32xf32>
    tpu.vector_store %arg9[%91, %c0_39], %90 {strides = array<i32>} : memref<64x32xf32, #tpu.memory_space<vmem>>, vector<8x32xf32>,
    %c2_i32 = arith.constant 2 : i32
    %c8_i32_40 = arith.constant 8 : i32
    %93 = arith.muli %c2_i32, %c8_i32_40 : i32
    %94 = tpu.assume_multiple %93, 8 : i32
    %95 = arith.index_cast %94 : i32 to index
    %c0_41 = arith.constant 0 : index
    %96 = vector.load %arg8[%95, %c0_41] : memref<64x128xf32, #tpu.memory_space<vmem>>, vector<8x128xf32>
    %97 = arith.truncf %90 : vector<8x32xf32> to vector<8x32xbf16>
    %cst_42 = arith.constant dense<0.000000e+00> : vector<8x128xf32>
    %98 = tpu.matmul %97, %10, %cst_42 {dimension_numbers = #tpu.dot_dimension_numbers<[1], [0], [0], [1], [0, 0, 1, 1], [], []>} : vector<8x32xbf16>, vector<32x128xbf16>, vector<8x128xf32> -> vector<8x128xf32>
    %99 = arith.addf %96, %98 : vector<8x128xf32>
    %100 = vector.extract_strided_slice %99 {offsets = [0, 0], sizes = [8, 32], strides = [1, 1]} : vector<8x128xf32> to vector<8x32xf32>
    %cst_43 = arith.constant 5.000000e-01 : f32
    %101 = vector.broadcast %cst_43 : f32 to vector<8x32xf32>
    %102 = arith.mulf %101, %100 : vector<8x32xf32>
    %103 = math.tanh %102 : vector<8x32xf32>
    %cst_44 = arith.constant 1.000000e+00 : f32
    %104 = vector.broadcast %cst_44 : f32 to vector<8x32xf32>
    %105 = arith.addf %103, %104 : vector<8x32xf32>
    %cst_45 = arith.constant 5.000000e-01 : f32
    %106 = vector.broadcast %cst_45 : f32 to vector<8x32xf32>
    %107 = arith.mulf %106, %105 : vector<8x32xf32>
    %108 = vector.extract_strided_slice %99 {offsets = [0, 32], sizes = [8, 32], strides = [1, 1]} : vector<8x128xf32> to vector<8x32xf32>
    %cst_46 = arith.constant 5.000000e-01 : f32
    %109 = vector.broadcast %cst_46 : f32 to vector<8x32xf32>
    %110 = arith.mulf %109, %108 : vector<8x32xf32>
    %111 = math.tanh %110 : vector<8x32xf32>
    %cst_47 = arith.constant 1.000000e+00 : f32
    %112 = vector.broadcast %cst_47 : f32 to vector<8x32xf32>
    %113 = arith.addf %111, %112 : vector<8x32xf32>
    %cst_48 = arith.constant 5.000000e-01 : f32
    %114 = vector.broadcast %cst_48 : f32 to vector<8x32xf32>
    %115 = arith.mulf %114, %113 : vector<8x32xf32>
    %116 = vector.extract_strided_slice %99 {offsets = [0, 64], sizes = [8, 32], strides = [1, 1]} : vector<8x128xf32> to vector<8x32xf32>
    %117 = math.tanh %116 : vector<8x32xf32>
    %118 = vector.extract_strided_slice %99 {offsets = [0, 96], sizes = [8, 32], strides = [1, 1]} : vector<8x128xf32> to vector<8x32xf32>
    %cst_49 = arith.constant 5.000000e-01 : f32
    %119 = vector.broadcast %cst_49 : f32 to vector<8x32xf32>
    %120 = arith.mulf %119, %118 : vector<8x32xf32>
    %121 = math.tanh %120 : vector<8x32xf32>
    %cst_50 = arith.constant 1.000000e+00 : f32
    %122 = vector.broadcast %cst_50 : f32 to vector<8x32xf32>
    %123 = arith.addf %121, %122 : vector<8x32xf32>
    %cst_51 = arith.constant 5.000000e-01 : f32
    %124 = vector.broadcast %cst_51 : f32 to vector<8x32xf32>
    %125 = arith.mulf %124, %123 : vector<8x32xf32>
    %126 = arith.mulf %115, %88 : vector<8x32xf32>
    %127 = arith.mulf %107, %117 : vector<8x32xf32>
    %128 = arith.addf %126, %127 : vector<8x32xf32>
    %129 = math.tanh %128 : vector<8x32xf32>
    %130 = arith.mulf %125, %129 : vector<8x32xf32>
    %131 = arith.index_cast %94 : i32 to index
    %c0_52 = arith.constant 0 : index
    %132 = vector.load %arg9[%131, %c0_52] : memref<64x32xf32, #tpu.memory_space<vmem>>, vector<8x32xf32>
    tpu.vector_store %arg9[%131, %c0_52], %130 {strides = array<i32>} : memref<64x32xf32, #tpu.memory_space<vmem>>, vector<8x32xf32>,
    %c3_i32 = arith.constant 3 : i32
    %c8_i32_53 = arith.constant 8 : i32
    %133 = arith.muli %c3_i32, %c8_i32_53 : i32
    %134 = tpu.assume_multiple %133, 8 : i32
    %135 = arith.index_cast %134 : i32 to index
    %c0_54 = arith.constant 0 : index
    %136 = vector.load %arg8[%135, %c0_54] : memref<64x128xf32, #tpu.memory_space<vmem>>, vector<8x128xf32>
    %137 = arith.truncf %130 : vector<8x32xf32> to vector<8x32xbf16>
    %cst_55 = arith.constant dense<0.000000e+00> : vector<8x128xf32>
    %138 = tpu.matmul %137, %10, %cst_55 {dimension_numbers = #tpu.dot_dimension_numbers<[1], [0], [0], [1], [0, 0, 1, 1], [], []>} : vector<8x32xbf16>, vector<32x128xbf16>, vector<8x128xf32> -> vector<8x128xf32>
    %139 = arith.addf %136, %138 : vector<8x128xf32>
    %140 = vector.extract_strided_slice %139 {offsets = [0, 0], sizes = [8, 32], strides = [1, 1]} : vector<8x128xf32> to vector<8x32xf32>
    %cst_56 = arith.constant 5.000000e-01 : f32
    %141 = vector.broadcast %cst_56 : f32 to vector<8x32xf32>
    %142 = arith.mulf %141, %140 : vector<8x32xf32>
    %143 = math.tanh %142 : vector<8x32xf32>
    %cst_57 = arith.constant 1.000000e+00 : f32
    %144 = vector.broadcast %cst_57 : f32 to vector<8x32xf32>
    %145 = arith.addf %143, %144 : vector<8x32xf32>
    %cst_58 = arith.constant 5.000000e-01 : f32
    %146 = vector.broadcast %cst_58 : f32 to vector<8x32xf32>
    %147 = arith.mulf %146, %145 : vector<8x32xf32>
    %148 = vector.extract_strided_slice %139 {offsets = [0, 32], sizes = [8, 32], strides = [1, 1]} : vector<8x128xf32> to vector<8x32xf32>
    %cst_59 = arith.constant 5.000000e-01 : f32
    %149 = vector.broadcast %cst_59 : f32 to vector<8x32xf32>
    %150 = arith.mulf %149, %148 : vector<8x32xf32>
    %151 = math.tanh %150 : vector<8x32xf32>
    %cst_60 = arith.constant 1.000000e+00 : f32
    %152 = vector.broadcast %cst_60 : f32 to vector<8x32xf32>
    %153 = arith.addf %151, %152 : vector<8x32xf32>
    %cst_61 = arith.constant 5.000000e-01 : f32
    %154 = vector.broadcast %cst_61 : f32 to vector<8x32xf32>
    %155 = arith.mulf %154, %153 : vector<8x32xf32>
    %156 = vector.extract_strided_slice %139 {offsets = [0, 64], sizes = [8, 32], strides = [1, 1]} : vector<8x128xf32> to vector<8x32xf32>
    %157 = math.tanh %156 : vector<8x32xf32>
    %158 = vector.extract_strided_slice %139 {offsets = [0, 96], sizes = [8, 32], strides = [1, 1]} : vector<8x128xf32> to vector<8x32xf32>
    %cst_62 = arith.constant 5.000000e-01 : f32
    %159 = vector.broadcast %cst_62 : f32 to vector<8x32xf32>
    %160 = arith.mulf %159, %158 : vector<8x32xf32>
    %161 = math.tanh %160 : vector<8x32xf32>
    %cst_63 = arith.constant 1.000000e+00 : f32
    %162 = vector.broadcast %cst_63 : f32 to vector<8x32xf32>
    %163 = arith.addf %161, %162 : vector<8x32xf32>
    %cst_64 = arith.constant 5.000000e-01 : f32
    %164 = vector.broadcast %cst_64 : f32 to vector<8x32xf32>
    %165 = arith.mulf %164, %163 : vector<8x32xf32>
    %166 = arith.mulf %155, %128 : vector<8x32xf32>
    %167 = arith.mulf %147, %157 : vector<8x32xf32>
    %168 = arith.addf %166, %167 : vector<8x32xf32>
    %169 = math.tanh %168 : vector<8x32xf32>
    %170 = arith.mulf %165, %169 : vector<8x32xf32>
    %171 = arith.index_cast %134 : i32 to index
    %c0_65 = arith.constant 0 : index
    %172 = vector.load %arg9[%171, %c0_65] : memref<64x32xf32, #tpu.memory_space<vmem>>, vector<8x32xf32>
    tpu.vector_store %arg9[%171, %c0_65], %170 {strides = array<i32>} : memref<64x32xf32, #tpu.memory_space<vmem>>, vector<8x32xf32>,
    %c4_i32 = arith.constant 4 : i32
    %c8_i32_66 = arith.constant 8 : i32
    %173 = arith.muli %c4_i32, %c8_i32_66 : i32
    %174 = tpu.assume_multiple %173, 8 : i32
    %175 = arith.index_cast %174 : i32 to index
    %c0_67 = arith.constant 0 : index
    %176 = vector.load %arg8[%175, %c0_67] : memref<64x128xf32, #tpu.memory_space<vmem>>, vector<8x128xf32>
    %177 = arith.truncf %170 : vector<8x32xf32> to vector<8x32xbf16>
    %cst_68 = arith.constant dense<0.000000e+00> : vector<8x128xf32>
    %178 = tpu.matmul %177, %10, %cst_68 {dimension_numbers = #tpu.dot_dimension_numbers<[1], [0], [0], [1], [0, 0, 1, 1], [], []>} : vector<8x32xbf16>, vector<32x128xbf16>, vector<8x128xf32> -> vector<8x128xf32>
    %179 = arith.addf %176, %178 : vector<8x128xf32>
    %180 = vector.extract_strided_slice %179 {offsets = [0, 0], sizes = [8, 32], strides = [1, 1]} : vector<8x128xf32> to vector<8x32xf32>
    %cst_69 = arith.constant 5.000000e-01 : f32
    %181 = vector.broadcast %cst_69 : f32 to vector<8x32xf32>
    %182 = arith.mulf %181, %180 : vector<8x32xf32>
    %183 = math.tanh %182 : vector<8x32xf32>
    %cst_70 = arith.constant 1.000000e+00 : f32
    %184 = vector.broadcast %cst_70 : f32 to vector<8x32xf32>
    %185 = arith.addf %183, %184 : vector<8x32xf32>
    %cst_71 = arith.constant 5.000000e-01 : f32
    %186 = vector.broadcast %cst_71 : f32 to vector<8x32xf32>
    %187 = arith.mulf %186, %185 : vector<8x32xf32>
    %188 = vector.extract_strided_slice %179 {offsets = [0, 32], sizes = [8, 32], strides = [1, 1]} : vector<8x128xf32> to vector<8x32xf32>
    %cst_72 = arith.constant 5.000000e-01 : f32
    %189 = vector.broadcast %cst_72 : f32 to vector<8x32xf32>
    %190 = arith.mulf %189, %188 : vector<8x32xf32>
    %191 = math.tanh %190 : vector<8x32xf32>
    %cst_73 = arith.constant 1.000000e+00 : f32
    %192 = vector.broadcast %cst_73 : f32 to vector<8x32xf32>
    %193 = arith.addf %191, %192 : vector<8x32xf32>
    %cst_74 = arith.constant 5.000000e-01 : f32
    %194 = vector.broadcast %cst_74 : f32 to vector<8x32xf32>
    %195 = arith.mulf %194, %193 : vector<8x32xf32>
    %196 = vector.extract_strided_slice %179 {offsets = [0, 64], sizes = [8, 32], strides = [1, 1]} : vector<8x128xf32> to vector<8x32xf32>
    %197 = math.tanh %196 : vector<8x32xf32>
    %198 = vector.extract_strided_slice %179 {offsets = [0, 96], sizes = [8, 32], strides = [1, 1]} : vector<8x128xf32> to vector<8x32xf32>
    %cst_75 = arith.constant 5.000000e-01 : f32
    %199 = vector.broadcast %cst_75 : f32 to vector<8x32xf32>
    %200 = arith.mulf %199, %198 : vector<8x32xf32>
    %201 = math.tanh %200 : vector<8x32xf32>
    %cst_76 = arith.constant 1.000000e+00 : f32
    %202 = vector.broadcast %cst_76 : f32 to vector<8x32xf32>
    %203 = arith.addf %201, %202 : vector<8x32xf32>
    %cst_77 = arith.constant 5.000000e-01 : f32
    %204 = vector.broadcast %cst_77 : f32 to vector<8x32xf32>
    %205 = arith.mulf %204, %203 : vector<8x32xf32>
    %206 = arith.mulf %195, %168 : vector<8x32xf32>
    %207 = arith.mulf %187, %197 : vector<8x32xf32>
    %208 = arith.addf %206, %207 : vector<8x32xf32>
    %209 = math.tanh %208 : vector<8x32xf32>
    %210 = arith.mulf %205, %209 : vector<8x32xf32>
    %211 = arith.index_cast %174 : i32 to index
    %c0_78 = arith.constant 0 : index
    %212 = vector.load %arg9[%211, %c0_78] : memref<64x32xf32, #tpu.memory_space<vmem>>, vector<8x32xf32>
    tpu.vector_store %arg9[%211, %c0_78], %210 {strides = array<i32>} : memref<64x32xf32, #tpu.memory_space<vmem>>, vector<8x32xf32>,
    %c5_i32 = arith.constant 5 : i32
    %c8_i32_79 = arith.constant 8 : i32
    %213 = arith.muli %c5_i32, %c8_i32_79 : i32
    %214 = tpu.assume_multiple %213, 8 : i32
    %215 = arith.index_cast %214 : i32 to index
    %c0_80 = arith.constant 0 : index
    %216 = vector.load %arg8[%215, %c0_80] : memref<64x128xf32, #tpu.memory_space<vmem>>, vector<8x128xf32>
    %217 = arith.truncf %210 : vector<8x32xf32> to vector<8x32xbf16>
    %cst_81 = arith.constant dense<0.000000e+00> : vector<8x128xf32>
    %218 = tpu.matmul %217, %10, %cst_81 {dimension_numbers = #tpu.dot_dimension_numbers<[1], [0], [0], [1], [0, 0, 1, 1], [], []>} : vector<8x32xbf16>, vector<32x128xbf16>, vector<8x128xf32> -> vector<8x128xf32>
    %219 = arith.addf %216, %218 : vector<8x128xf32>
    %220 = vector.extract_strided_slice %219 {offsets = [0, 0], sizes = [8, 32], strides = [1, 1]} : vector<8x128xf32> to vector<8x32xf32>
    %cst_82 = arith.constant 5.000000e-01 : f32
    %221 = vector.broadcast %cst_82 : f32 to vector<8x32xf32>
    %222 = arith.mulf %221, %220 : vector<8x32xf32>
    %223 = math.tanh %222 : vector<8x32xf32>
    %cst_83 = arith.constant 1.000000e+00 : f32
    %224 = vector.broadcast %cst_83 : f32 to vector<8x32xf32>
    %225 = arith.addf %223, %224 : vector<8x32xf32>
    %cst_84 = arith.constant 5.000000e-01 : f32
    %226 = vector.broadcast %cst_84 : f32 to vector<8x32xf32>
    %227 = arith.mulf %226, %225 : vector<8x32xf32>
    %228 = vector.extract_strided_slice %219 {offsets = [0, 32], sizes = [8, 32], strides = [1, 1]} : vector<8x128xf32> to vector<8x32xf32>
    %cst_85 = arith.constant 5.000000e-01 : f32
    %229 = vector.broadcast %cst_85 : f32 to vector<8x32xf32>
    %230 = arith.mulf %229, %228 : vector<8x32xf32>
    %231 = math.tanh %230 : vector<8x32xf32>
    %cst_86 = arith.constant 1.000000e+00 : f32
    %232 = vector.broadcast %cst_86 : f32 to vector<8x32xf32>
    %233 = arith.addf %231, %232 : vector<8x32xf32>
    %cst_87 = arith.constant 5.000000e-01 : f32
    %234 = vector.broadcast %cst_87 : f32 to vector<8x32xf32>
    %235 = arith.mulf %234, %233 : vector<8x32xf32>
    %236 = vector.extract_strided_slice %219 {offsets = [0, 64], sizes = [8, 32], strides = [1, 1]} : vector<8x128xf32> to vector<8x32xf32>
    %237 = math.tanh %236 : vector<8x32xf32>
    %238 = vector.extract_strided_slice %219 {offsets = [0, 96], sizes = [8, 32], strides = [1, 1]} : vector<8x128xf32> to vector<8x32xf32>
    %cst_88 = arith.constant 5.000000e-01 : f32
    %239 = vector.broadcast %cst_88 : f32 to vector<8x32xf32>
    %240 = arith.mulf %239, %238 : vector<8x32xf32>
    %241 = math.tanh %240 : vector<8x32xf32>
    %cst_89 = arith.constant 1.000000e+00 : f32
    %242 = vector.broadcast %cst_89 : f32 to vector<8x32xf32>
    %243 = arith.addf %241, %242 : vector<8x32xf32>
    %cst_90 = arith.constant 5.000000e-01 : f32
    %244 = vector.broadcast %cst_90 : f32 to vector<8x32xf32>
    %245 = arith.mulf %244, %243 : vector<8x32xf32>
    %246 = arith.mulf %235, %208 : vector<8x32xf32>
    %247 = arith.mulf %227, %237 : vector<8x32xf32>
    %248 = arith.addf %246, %247 : vector<8x32xf32>
    %249 = math.tanh %248 : vector<8x32xf32>
    %250 = arith.mulf %245, %249 : vector<8x32xf32>
    %251 = arith.index_cast %214 : i32 to index
    %c0_91 = arith.constant 0 : index
    %252 = vector.load %arg9[%251, %c0_91] : memref<64x32xf32, #tpu.memory_space<vmem>>, vector<8x32xf32>
    tpu.vector_store %arg9[%251, %c0_91], %250 {strides = array<i32>} : memref<64x32xf32, #tpu.memory_space<vmem>>, vector<8x32xf32>,
    %c6_i32 = arith.constant 6 : i32
    %c8_i32_92 = arith.constant 8 : i32
    %253 = arith.muli %c6_i32, %c8_i32_92 : i32
    %254 = tpu.assume_multiple %253, 8 : i32
    %255 = arith.index_cast %254 : i32 to index
    %c0_93 = arith.constant 0 : index
    %256 = vector.load %arg8[%255, %c0_93] : memref<64x128xf32, #tpu.memory_space<vmem>>, vector<8x128xf32>
    %257 = arith.truncf %250 : vector<8x32xf32> to vector<8x32xbf16>
    %cst_94 = arith.constant dense<0.000000e+00> : vector<8x128xf32>
    %258 = tpu.matmul %257, %10, %cst_94 {dimension_numbers = #tpu.dot_dimension_numbers<[1], [0], [0], [1], [0, 0, 1, 1], [], []>} : vector<8x32xbf16>, vector<32x128xbf16>, vector<8x128xf32> -> vector<8x128xf32>
    %259 = arith.addf %256, %258 : vector<8x128xf32>
    %260 = vector.extract_strided_slice %259 {offsets = [0, 0], sizes = [8, 32], strides = [1, 1]} : vector<8x128xf32> to vector<8x32xf32>
    %cst_95 = arith.constant 5.000000e-01 : f32
    %261 = vector.broadcast %cst_95 : f32 to vector<8x32xf32>
    %262 = arith.mulf %261, %260 : vector<8x32xf32>
    %263 = math.tanh %262 : vector<8x32xf32>
    %cst_96 = arith.constant 1.000000e+00 : f32
    %264 = vector.broadcast %cst_96 : f32 to vector<8x32xf32>
    %265 = arith.addf %263, %264 : vector<8x32xf32>
    %cst_97 = arith.constant 5.000000e-01 : f32
    %266 = vector.broadcast %cst_97 : f32 to vector<8x32xf32>
    %267 = arith.mulf %266, %265 : vector<8x32xf32>
    %268 = vector.extract_strided_slice %259 {offsets = [0, 32], sizes = [8, 32], strides = [1, 1]} : vector<8x128xf32> to vector<8x32xf32>
    %cst_98 = arith.constant 5.000000e-01 : f32
    %269 = vector.broadcast %cst_98 : f32 to vector<8x32xf32>
    %270 = arith.mulf %269, %268 : vector<8x32xf32>
    %271 = math.tanh %270 : vector<8x32xf32>
    %cst_99 = arith.constant 1.000000e+00 : f32
    %272 = vector.broadcast %cst_99 : f32 to vector<8x32xf32>
    %273 = arith.addf %271, %272 : vector<8x32xf32>
    %cst_100 = arith.constant 5.000000e-01 : f32
    %274 = vector.broadcast %cst_100 : f32 to vector<8x32xf32>
    %275 = arith.mulf %274, %273 : vector<8x32xf32>
    %276 = vector.extract_strided_slice %259 {offsets = [0, 64], sizes = [8, 32], strides = [1, 1]} : vector<8x128xf32> to vector<8x32xf32>
    %277 = math.tanh %276 : vector<8x32xf32>
    %278 = vector.extract_strided_slice %259 {offsets = [0, 96], sizes = [8, 32], strides = [1, 1]} : vector<8x128xf32> to vector<8x32xf32>
    %cst_101 = arith.constant 5.000000e-01 : f32
    %279 = vector.broadcast %cst_101 : f32 to vector<8x32xf32>
    %280 = arith.mulf %279, %278 : vector<8x32xf32>
    %281 = math.tanh %280 : vector<8x32xf32>
    %cst_102 = arith.constant 1.000000e+00 : f32
    %282 = vector.broadcast %cst_102 : f32 to vector<8x32xf32>
    %283 = arith.addf %281, %282 : vector<8x32xf32>
    %cst_103 = arith.constant 5.000000e-01 : f32
    %284 = vector.broadcast %cst_103 : f32 to vector<8x32xf32>
    %285 = arith.mulf %284, %283 : vector<8x32xf32>
    %286 = arith.mulf %275, %248 : vector<8x32xf32>
    %287 = arith.mulf %267, %277 : vector<8x32xf32>
    %288 = arith.addf %286, %287 : vector<8x32xf32>
    %289 = math.tanh %288 : vector<8x32xf32>
    %290 = arith.mulf %285, %289 : vector<8x32xf32>
    %291 = arith.index_cast %254 : i32 to index
    %c0_104 = arith.constant 0 : index
    %292 = vector.load %arg9[%291, %c0_104] : memref<64x32xf32, #tpu.memory_space<vmem>>, vector<8x32xf32>
    tpu.vector_store %arg9[%291, %c0_104], %290 {strides = array<i32>} : memref<64x32xf32, #tpu.memory_space<vmem>>, vector<8x32xf32>,
    %c7_i32 = arith.constant 7 : i32
    %c8_i32_105 = arith.constant 8 : i32
    %293 = arith.muli %c7_i32, %c8_i32_105 : i32
    %294 = tpu.assume_multiple %293, 8 : i32
    %295 = arith.index_cast %294 : i32 to index
    %c0_106 = arith.constant 0 : index
    %296 = vector.load %arg8[%295, %c0_106] : memref<64x128xf32, #tpu.memory_space<vmem>>, vector<8x128xf32>
    %297 = arith.truncf %290 : vector<8x32xf32> to vector<8x32xbf16>
    %cst_107 = arith.constant dense<0.000000e+00> : vector<8x128xf32>
    %298 = tpu.matmul %297, %10, %cst_107 {dimension_numbers = #tpu.dot_dimension_numbers<[1], [0], [0], [1], [0, 0, 1, 1], [], []>} : vector<8x32xbf16>, vector<32x128xbf16>, vector<8x128xf32> -> vector<8x128xf32>
    %299 = arith.addf %296, %298 : vector<8x128xf32>
    %300 = vector.extract_strided_slice %299 {offsets = [0, 0], sizes = [8, 32], strides = [1, 1]} : vector<8x128xf32> to vector<8x32xf32>
    %cst_108 = arith.constant 5.000000e-01 : f32
    %301 = vector.broadcast %cst_108 : f32 to vector<8x32xf32>
    %302 = arith.mulf %301, %300 : vector<8x32xf32>
    %303 = math.tanh %302 : vector<8x32xf32>
    %cst_109 = arith.constant 1.000000e+00 : f32
    %304 = vector.broadcast %cst_109 : f32 to vector<8x32xf32>
    %305 = arith.addf %303, %304 : vector<8x32xf32>
    %cst_110 = arith.constant 5.000000e-01 : f32
    %306 = vector.broadcast %cst_110 : f32 to vector<8x32xf32>
    %307 = arith.mulf %306, %305 : vector<8x32xf32>
    %308 = vector.extract_strided_slice %299 {offsets = [0, 32], sizes = [8, 32], strides = [1, 1]} : vector<8x128xf32> to vector<8x32xf32>
    %cst_111 = arith.constant 5.000000e-01 : f32
    %309 = vector.broadcast %cst_111 : f32 to vector<8x32xf32>
    %310 = arith.mulf %309, %308 : vector<8x32xf32>
    %311 = math.tanh %310 : vector<8x32xf32>
    %cst_112 = arith.constant 1.000000e+00 : f32
    %312 = vector.broadcast %cst_112 : f32 to vector<8x32xf32>
    %313 = arith.addf %311, %312 : vector<8x32xf32>
    %cst_113 = arith.constant 5.000000e-01 : f32
    %314 = vector.broadcast %cst_113 : f32 to vector<8x32xf32>
    %315 = arith.mulf %314, %313 : vector<8x32xf32>
    %316 = vector.extract_strided_slice %299 {offsets = [0, 64], sizes = [8, 32], strides = [1, 1]} : vector<8x128xf32> to vector<8x32xf32>
    %317 = math.tanh %316 : vector<8x32xf32>
    %318 = vector.extract_strided_slice %299 {offsets = [0, 96], sizes = [8, 32], strides = [1, 1]} : vector<8x128xf32> to vector<8x32xf32>
    %cst_114 = arith.constant 5.000000e-01 : f32
    %319 = vector.broadcast %cst_114 : f32 to vector<8x32xf32>
    %320 = arith.mulf %319, %318 : vector<8x32xf32>
    %321 = math.tanh %320 : vector<8x32xf32>
    %cst_115 = arith.constant 1.000000e+00 : f32
    %322 = vector.broadcast %cst_115 : f32 to vector<8x32xf32>
    %323 = arith.addf %321, %322 : vector<8x32xf32>
    %cst_116 = arith.constant 5.000000e-01 : f32
    %324 = vector.broadcast %cst_116 : f32 to vector<8x32xf32>
    %325 = arith.mulf %324, %323 : vector<8x32xf32>
    %326 = arith.mulf %315, %288 : vector<8x32xf32>
    %327 = arith.mulf %307, %317 : vector<8x32xf32>
    %328 = arith.addf %326, %327 : vector<8x32xf32>
    %329 = math.tanh %328 : vector<8x32xf32>
    %330 = arith.mulf %325, %329 : vector<8x32xf32>
    %331 = arith.index_cast %294 : i32 to index
    %c0_117 = arith.constant 0 : index
    %332 = vector.load %arg9[%331, %c0_117] : memref<64x32xf32, #tpu.memory_space<vmem>>, vector<8x32xf32>
    tpu.vector_store %arg9[%331, %c0_117], %330 {strides = array<i32>} : memref<64x32xf32, #tpu.memory_space<vmem>>, vector<8x32xf32>,
    %c8_i32_118 = arith.constant 8 : i32
    %c0_119 = arith.constant 0 : index
    %c0_120 = arith.constant 0 : index
    %333 = vector.load %arg10[%c0_119, %c0_120] : memref<8x32xf32, #tpu.memory_space<vmem>>, vector<8x32xf32>
    tpu.vector_store %arg10[%c0_119, %c0_120], %330 {strides = array<i32>} : memref<8x32xf32, #tpu.memory_space<vmem>>, vector<8x32xf32>,
    %c0_121 = arith.constant 0 : index
    %c0_122 = arith.constant 0 : index
    %334 = vector.load %arg11[%c0_121, %c0_122] : memref<8x32xf32, #tpu.memory_space<vmem>>, vector<8x32xf32>
    tpu.vector_store %arg11[%c0_121, %c0_122], %328 {strides = array<i32>} : memref<8x32xf32, #tpu.memory_space<vmem>>, vector<8x32xf32>,
    %c0_123 = arith.constant 0 : index
    %c0_124 = arith.constant 0 : index
    %335 = vector.load %arg9[%c0_123, %c0_124] : memref<64x32xf32, #tpu.memory_space<vmem>>, vector<64x32xf32>
    %336 = arith.truncf %335 : vector<64x32xf32> to vector<64x32xbf16>
    %c0_125 = arith.constant 0 : index
    %c0_126 = arith.constant 0 : index
    %337 = vector.load %arg5[%c0_125, %c0_126] : memref<32x128xbf16, #tpu.memory_space<vmem>>, vector<32x128xbf16>
    %cst_127 = arith.constant dense<0.000000e+00> : vector<64x128xf32>
    %338 = tpu.matmul %336, %337, %cst_127 {dimension_numbers = #tpu.dot_dimension_numbers<[1], [0], [0], [1], [0, 0, 1, 1], [], []>} : vector<64x32xbf16>, vector<32x128xbf16>, vector<64x128xf32> -> vector<64x128xf32>
    %c0_128 = arith.constant 0 : index
    %c0_129 = arith.constant 0 : index
    %339 = vector.load %arg6[%c0_128, %c0_129] : memref<1x128xf32, #tpu.memory_space<vmem>>, vector<1x128xf32>
    %340 = vector.broadcast %339 : vector<1x128xf32> to vector<64x128xf32>
    %341 = arith.addf %338, %340 : vector<64x128xf32>
    %cst_130 = arith.constant dense<0xFF800000> : vector<64xf32>
    %342 = vector.multi_reduction <maximumf>, %341, %cst_130 [1] : vector<64x128xf32> to vector<64xf32>
    %343 = vector.shape_cast %342 : vector<64xf32> to vector<64x1xf32>
    %344 = vector.broadcast %343 : vector<64x1xf32> to vector<64x128xf32>
    %345 = arith.subf %341, %344 : vector<64x128xf32>
    %346 = math.exp %345 : vector<64x128xf32>
    %cst_131 = arith.constant dense<0.000000e+00> : vector<64xf32>
    %347 = vector.multi_reduction <add>, %346, %cst_131 [1] : vector<64x128xf32> to vector<64xf32>
    %348 = vector.shape_cast %347 : vector<64xf32> to vector<64x1xf32>
    %349 = math.log %348 : vector<64x1xf32>
    %350 = vector.broadcast %349 : vector<64x1xf32> to vector<64x128xf32>
    %351 = arith.subf %345, %350 : vector<64x128xf32>
    %c0_132 = arith.constant 0 : index
    %c0_133 = arith.constant 0 : index
    %352 = vector.load %arg7[%c0_132, %c0_133] : memref<64x128xf32, #tpu.memory_space<vmem>>, vector<64x128xf32>
    tpu.vector_store %arg7[%c0_132, %c0_133], %351 {strides = array<i32>} : memref<64x128xf32, #tpu.memory_space<vmem>>, vector<64x128xf32>,
    return
  }
  func.func @transform_0(%arg0: i32) -> (i32, i32) {
    %c0_i32 = arith.constant 0 : i32
    %c0_i32_0 = arith.constant 0 : i32
    return %arg0, %c0_i32 : i32, i32
  }
  func.func @transform_1(%arg0: i32) -> (i32, i32) {
    %c0_i32 = arith.constant 0 : i32
    %c0_i32_0 = arith.constant 0 : i32
    %c0_i32_1 = arith.constant 0 : i32
    return %c0_i32, %c0_i32_0 : i32, i32
  }
  func.func @transform_2(%arg0: i32) -> (i32, i32) {
    %c0_i32 = arith.constant 0 : i32
    %c0_i32_0 = arith.constant 0 : i32
    %c0_i32_1 = arith.constant 0 : i32
    return %c0_i32, %c0_i32_0 : i32, i32
  }
  func.func @transform_3(%arg0: i32) -> (i32, i32) {
    %c0_i32 = arith.constant 0 : i32
    %c0_i32_0 = arith.constant 0 : i32
    %c0_i32_1 = arith.constant 0 : i32
    return %c0_i32, %c0_i32_0 : i32, i32
  }
  func.func @transform_4(%arg0: i32) -> (i32, i32) {
    %c0_i32 = arith.constant 0 : i32
    %c0_i32_0 = arith.constant 0 : i32
    %c0_i32_1 = arith.constant 0 : i32
    return %c0_i32, %c0_i32_0 : i32, i32
  }
  func.func @transform_5(%arg0: i32) -> (i32, i32) {
    %c0_i32 = arith.constant 0 : i32
    %c0_i32_0 = arith.constant 0 : i32
    %c0_i32_1 = arith.constant 0 : i32
    return %c0_i32, %c0_i32_0 : i32, i32
  }
  func.func @transform_6(%arg0: i32) -> (i32, i32) {
    %c0_i32 = arith.constant 0 : i32
    %c0_i32_0 = arith.constant 0 : i32
    return %arg0, %c0_i32 : i32, i32
  }
}

</mosaic_0001>

<bundles_post_ra>
// kernel: tpu_custom_call.1
= control target key start
LH: loop header
LB: loop body
LE: loop exit
PB: predicated region body
PF: predicated region fallthrough
CT: control target
= control target key end

     0   :  { %11 = vsyncpa [#allocation7], 0  ;;  %s1867_s0 = inlined_call_operand.hbm [shape: bf16[64,128], index: 0, kind: input, shape index: {}]   ;;  %s1868_s1 = inlined_call_operand.hbm [shape: bf16[128,128], index: 1, kind: input, shape index: {}]   ;;  %s1869_s2 = inlined_call_operand.hbm [shape: bf16[32,128], index: 2, kind: input, shape index: {}]   ;;  %s1870_s3 = inlined_call_operand.vmem [shape: f32[1,128], index: 3, kind: input, shape index: {}]   ;;  %s1871_s4 = inlined_call_operand.hbm [shape: bf16[32,128], index: 4, kind: input, shape index: {}]   ;;  %s1872_s5 = inlined_call_operand.vmem [shape: f32[1,128], index: 5, kind: input, shape index: {}]   ;;  %s1873_s6 = inlined_call_operand.hbm [shape: f32[64,128], index: 6, kind: output, shape index: {}]  }
   0x1   :  { %12 = vsyncpa [#allocation10], 0 }
   0x2   :  { %13 = vsyncpa [#allocation13], 0 }
   0x3   :  { %14 = vsyncpa [#allocation8], 0  ;;  %s1529_s21 = smov [#allocation9]   ;;  %s1530_s23 = smov [#allocation6]  }
   0x4   :  { %s32_s22 = sshll.u32 %s1529_s21, 4  ;;  %s20_s24 = sshll.u32 %s1530_s23, 4  ;;  %s33_s22 = int_to_ptr.vmem [resolvable:$true] %s32_s22  ;;  %s1577_s24 = int_to_ptr.vmem [resolvable:$true] %s20_s24 }
   0x5   :  { %s1411_s27 = scalar_lea.hbm %s1868_s1, 1024 }
   0x6   :  { %p1412_p0 = scmp.ne.s32.totalorder %s1868_s1, %s1411_s27  ;;  %p1415_p1 = scmp.lt.u32.totalorder %s1411_s27, %s1868_s1 }
   0x8   :  { %p1417_p2 = pnand %p1415_p1, %p1412_p0 }
   0xa   :  { %1420 = shalt.err (!%p1417_p2)
}
   0xb   :  { %s1421_s8 = scalar_lea.vmem %s33_s22, 1024  ;;  %p1426_p4 = scmp.lt.s32.totalorder %s33_s22, %s33_s22 }
   0xc   :  { %p1422_p3 = scmp.ne.s32.totalorder %s33_s22, %s1421_s8  ;;  %p1427_p5 = scmp.lt.s32.totalorder %s1421_s8, %s1421_s8 }
   0xe   :  { %p1428_p6 = por %p1427_p5, %p1426_p4 }
  0x10   :  { %p1429_p7 = pnand %p1428_p6, %p1422_p3 }
  0x12   :  { %1432 = shalt.err (!%p1429_p7)
}
  0x13   :  { %s1531_s9 = smov 64   ;;  %s1532_s10 = smov 4  }
  0x14   :  { %38 = dma.hbm_to_vmem [thread:$0]  %s1868_s1, 1024, %s33_s22, [#allocation10], %s1531_s9, %s1531_s9, %s1532_s10  }
  0x15   :  { %s1433_s15 = scalar_lea.hbm %s1867_s0, 512 }
  0x16   :  { %p1434_p8 = scmp.ne.s32.totalorder %s1867_s0, %s1433_s15  ;;  %p1437_p9 = scmp.lt.u32.totalorder %s1433_s15, %s1867_s0 }
  0x18   :  { %p1439_p10 = pnand %p1437_p9, %p1434_p8 }
  0x1a   :  { %1442 = shalt.err (!%p1439_p10)
}
  0x1b   :  { %s1443_s20 = scalar_lea.vmem %s1577_s24, 512  ;;  %p1448_p12 = scmp.lt.s32.totalorder %s1577_s24, %s1577_s24 }
  0x1c   :  { %p1444_p11 = scmp.ne.s32.totalorder %s1577_s24, %s1443_s20  ;;  %p1449_p13 = scmp.lt.s32.totalorder %s1443_s20, %s1443_s20 }
  0x1e   :  { %p1450_p0 = por %p1449_p13, %p1448_p12 }
  0x20   :  { %p1451_p1 = pnand %p1450_p0, %p1444_p11 }
  0x22   :  { %1454 = shalt.err (!%p1451_p1)
}
  0x23   :  { %26 = dma.hbm_to_vmem [thread:$0]  %s1867_s0, 512, %s1577_s24, [#allocation7], %s1531_s9, %s1531_s9, %s1532_s10  }
  0x24   :  { %s1533_s22 = smov [#allocation11]   ;;  %s1534_s25 = smov [#allocation12]  }
  0x25   :  { %s44_s23 = sshll.u32 %s1533_s22, 4  ;;  %s58_s26 = sshll.u32 %s1534_s25, 4  ;;  %s45_s23 = int_to_ptr.vmem [resolvable:$true] %s44_s23  ;;  %s1614_s26 = int_to_ptr.vmem [resolvable:$true] %s58_s26 }
  0x26   :  { %s1455_s29 = scalar_lea.hbm %s1869_s2, 256 }
  0x27   :  { %p1456_p2 = scmp.ne.s32.totalorder %s1869_s2, %s1455_s29  ;;  %p1459_p3 = scmp.lt.u32.totalorder %s1455_s29, %s1869_s2 }
  0x29   :  { %p1461_p4 = pnand %p1459_p3, %p1456_p2 }
  0x2b   :  { %1464 = shalt.err (!%p1461_p4)
}
  0x2c   :  { %s1465_s0 = scalar_lea.vmem %s45_s23, 256  ;;  %p1470_p6 = scmp.lt.s32.totalorder %s45_s23, %s45_s23 }
  0x2d   :  { %p1466_p5 = scmp.ne.s32.totalorder %s45_s23, %s1465_s0  ;;  %p1471_p7 = scmp.lt.s32.totalorder %s1465_s0, %s1465_s0 }
  0x2f   :  { %p1472_p8 = por %p1471_p7, %p1470_p6 }
  0x31   :  { %p1473_p9 = pnand %p1472_p8, %p1466_p5 }
  0x33   :  { %1476 = shalt.err (!%p1473_p9)
}
  0x34   :  { %50 = dma.hbm_to_vmem [thread:$0]  %s1869_s2, 256, %s45_s23, [#allocation10], %s1531_s9, %s1531_s9, %s1532_s10  }
  0x35   :  { %s1477_s15 = scalar_lea.hbm %s1871_s4, 256 }
  0x36   :  { %p1478_p10 = scmp.ne.s32.totalorder %s1871_s4, %s1477_s15  ;;  %p1481_p11 = scmp.lt.u32.totalorder %s1477_s15, %s1871_s4 }
  0x38   :  { %p1483_p12 = pnand %p1481_p11, %p1478_p10 }
  0x3a   :  { %1486 = shalt.err (!%p1483_p12)
}
  0x3b   :  { %s1487_s20 = scalar_lea.vmem %s1614_s26, 256  ;;  %p1492_p0 = scmp.lt.s32.totalorder %s1614_s26, %s1614_s26 }
  0x3c   :  { %p1488_p13 = scmp.ne.s32.totalorder %s1614_s26, %s1487_s20  ;;  %p1493_p1 = scmp.lt.s32.totalorder %s1487_s20, %s1487_s20 }
  0x3e   :  { %p1494_p2 = por %p1493_p1, %p1492_p0 }
  0x40   :  { %p1495_p3 = pnand %p1494_p2, %p1488_p13 }
  0x42   :  { %1498 = shalt.err (!%p1495_p3)
}
  0x43   :  { %64 = dma.hbm_to_vmem [thread:$0]  %s1871_s4, 256, %s1614_s26, [#allocation13], %s1531_s9, %s1531_s9, %s1532_s10  }
  0x44   :  { %1521 = dma.done.wait [#allocation7], 512  }
  0x45   :  { %1522 = vsyncadd [#allocation7], 4294966784 }
  0x46   :  { %1523 = dma.done.wait [#allocation10], 1280  }
  0x47   :  { %1524 = vsyncadd [#allocation10], 4294966016 }
  0x48   :  { %1525 = dma.done.wait [#allocation13], 256  }
  0x49   :  { %1526 = vsyncadd [#allocation13], 4294967040  ;;  %vm84_vm0 = vcmask 261120   ;;  %v1535_v0 = vmov 0.0   ;;  %vm1536_vm1 = vmmov 0   ;;  %v1315_v1 = vld [vmem:[#allocation9] sm:$0xff]  }
  0x4a   :  { %1226 = vmatprep.subr.bf16.mxu1 %v1535_v0  ;;  %1230 = vmatprep.mubr.msk.bf16.mxu1 %vm1536_vm1, %v1535_v0  ;;  %85 = vst.msk [vmem:[#allocation4] sm:$0xff] %vm84_vm0, %v1535_v0  ;;  %86 = vst.msk [vmem:[#allocation5] sm:$0xff] %vm84_vm0, %v1535_v0  ;;  %v1316_v2 = vld [vmem:[#allocation9 + $0x8] sm:$0xff]   ;;  %v1317_v3 = vld [vmem:[#allocation9 + $0x10] sm:$0xff]   ;;  %s1537_s21 = smov 32   ;;  %s1539_s22 = smov [#allocation14]  }
  0x4b   :  { %1202 = vmatprep.subr.bf16.mxu0 %v1315_v1  ;;  %v1658_v4 = vld [vmem:[#allocation11] sm:$0xff]   ;;  %v1318_v5 = vld [vmem:[#allocation9 + $0x18] sm:$0xff]   ;;  %v1661_v6 = vld [vmem:[#allocation11 + $0x8] sm:$0xff]   ;;  %s1116_s23 = sshll.u32 %s1539_s22, 4  ;;  %s1117_s23 = int_to_ptr.vmem [resolvable:$true] %s1116_s23 }
  0x4c   :  { %1203 = vmatpush3.bf16.msra.mxu0 %v1315_v1  ;;  %1227 = vmatpush3.bf16.msra.mxu1 %v1658_v4  ;;  %v1325_v7 = vld [vmem:[#allocation6] sm:$0xff]   ;;  %v1320_v11 = vld [vmem:[#allocation9 + $0x28] sm:$0xff]   ;;  %v1321_v12 = vld [vmem:[#allocation9 + $0x30] sm:$0xff]   ;;  %s1499_s25 = scalar_lea.vmem %s1117_s23, 1024  ;;  %p1504_p5 = scmp.lt.s32.totalorder %s1117_s23, %s1117_s23 }
  0x4d   :  { %1204 = vmatprep.subr.bf16.mxu0 %v1316_v2  ;;  %1228 = vmatprep.subr.bf16.mxu1 %v1535_v0  ;;  %v1319_v8 = vld [vmem:[#allocation9 + $0x20] sm:$0xff]   ;;  %v1323_v13 = vld [vmem:[#allocation9 + $0x38] sm:$0xff]   ;;  %v1326_v14 = vld [vmem:[#allocation6 + $0x8] sm:$0xff]   ;;  %p1500_p4 = scmp.ne.s32.totalorder %s1117_s23, %s1499_s25  ;;  %p1505_p6 = scmp.lt.s32.totalorder %s1499_s25, %s1499_s25 }
  0x4e   :  { %1218 = vmatprep.mubr.bf16.mxu0 %v1325_v7  ;;  %v1681_v19 = vld [vmem:[%s1870_s3] ss:$0 sm:$0xff] }
  0x4f   :  { %p1506_p7 = por %p1505_p6, %p1504_p5 }
  0x50   :  { %1205 = vmatpush3.bf16.msra.mxu0 %v1316_v2  ;;  %1229 = vmatpush3.bf16.msra.mxu1 %v1661_v6 }
  0x51   :  { %1206 = vmatprep.subr.bf16.mxu0 %v1317_v3  ;;  %v267_v9 = vld [vmem:[#allocation4] sm:$0xff]  ;;  %1234 = vmatprep.subr.bf16.mxu1 %v1535_v0  ;;  %v268_v27 = vld [vmem:[#allocation5] sm:$0xff]  ;;  %p1507_p8 = pnand %p1506_p7, %p1500_p4 }
  0x52   :  { %v270_v10 = vpack.c.bf16 %v267_v9, %v267_v9 }
  0x54   :  { %1207 = vmatpush3.bf16.msra.mxu0 %v1317_v3  ;;  %1231 = vmatmul.mubr.msk.bf16.vlgmr.msra.gmra.mrb[0].mxu1 %vm84_vm0, %v270_v10 }
  0x55   :  { %1208 = vmatprep.subr.bf16.mxu0 %v1318_v5  ;;  %1235 = vmatpush3.bf16.msra.mxu1 %v1658_v4 }
  0x56   :  { %1238 = vmatprep.mubr.msk.bf16.mxu1 %vm1536_vm1, %v1535_v0  ;;  %1236 = vmatprep.subr.bf16.mxu1 %v1535_v0 }
  0x58   :  { %1209 = vmatpush3.bf16.msra.mxu0 %v1318_v5 }
  0x59   :  { %1210 = vmatprep.subr.bf16.mxu0 %v1319_v8  ;;  %1237 = vmatpush3.bf16.msra.mxu1 %v1661_v6 }
  0x5a   :  { %1242 = vmatprep.subr.bf16.mxu1 %v1535_v0 }
  0x5c   :  { %1211 = vmatpush3.bf16.msra.mxu0 %v1319_v8 }
  0x5d   :  { %1212 = vmatprep.subr.bf16.mxu0 %v1320_v11 }
  0x60   :  { %1213 = vmatpush3.bf16.msra.mxu0 %v1320_v11 }
  0x61   :  { %1214 = vmatprep.subr.bf16.mxu0 %v1321_v12 }
  0x64   :  { %1215 = vmatpush3.bf16.msra.mxu0 %v1321_v12 }
  0x65   :  { %1216 = vmatprep.subr.bf16.mxu0 %v1323_v13 }
  0x68   :  { %1217 = vmatpush3.bf16.msra.mxu0 %v1323_v13 }
  0x69   :  { %1266 = vmatprep.subr.bf16.mxu0 %v1535_v0 }
  0x6b   :  { %1219 = vmatmul.mubr.bf16.vlgmr.msra.gmra.mrb[0].mxu0 %v1326_v14 }
  0x6c   :  { %1267 = vmatpush3.bf16.msra.mxu0 %v1658_v4 }
  0x6d   :  { %1268 = vmatprep.subr.bf16.mxu0 %v1535_v0 }
  0x70   :  { %1269 = vmatpush3.bf16.msra.mxu0 %v1661_v6 }
  0x71   :  { %1282 = vmatprep.subr.bf16.mxu0 %v1535_v0 }
 0x127   :  { %v321_v15 = vpop.f32.mrb[0].mxu1 }
 0x128   :  { %v1232_v16 = vpop.f32.mrb[1].mxu1 }
 0x129   :  { %v324_v17 = vpop.f32.mrb[2].mxu1 }
 0x12a   :  { %v1233_v18 = vpop.f32.mrb[3].mxu1 }
 0x13e   :  { %v1683_v20 = vpop.f32.mrb[0].mxu0 }
 0x13f   :  { %v224_v21 = vpop.f32.mrb[1].mxu0  ;;  %v233_v1 = vadd.f32 %v1683_v20, %v1681_v19 }
 0x140   :  { %v225_v22 = vadd.f32 %v1681_v19, %v224_v21  ;;  %v1686_v23 = vpop.f32.mrb[2].mxu0 }
 0x141   :  { %v227_v24 = vpop.f32.mrb[3].mxu0 }
 0x142   :  { %v327_v25 = vadd.f32 %v321_v15, %v225_v22  ;;  %v228_v43 = vadd.f32 %v1681_v19, %v227_v24 }
 0x144   :  { %1331 = vtanh.f32 %v327_v25  ;;  %v328_v28 = vmul.f32 0.5, %v327_v25 }
 0x146   :  { %1333 = vtanh.f32 %v328_v28 }
 0x14e   :  { %v1332_v26 = vpop.eup %1331 }
 0x14f   :  { %339 = vrot.lane.b32.xlu0 %v1332_v26, %s1531_s9  ;;  %v236_v26 = vadd.f32 %v1686_v23, %v1681_v19 }
 0x150   :  { %v1334_v29 = vpop.eup %1333 }
 0x151   :  { %v330_v30 = vadd.f32 1.0, %v1334_v29 }
 0x153   :  { %334 = vrot.lane.b32.xlu0 %v268_v27, %s1537_s21  ;;  %v331_v31 = vmul.f32 0.5, %v330_v30 }
 0x1c1   :  { %v340_v32 = vpop.permute.xlu0 %339 }
 0x1c2   :  { %v342_v33 = vmul.f32 %v340_v32, %v331_v31 }
 0x1c4   :  { %344 = vrot.lane.b32.xlu1 %v342_v33, %s1537_s21 }
 0x1c5   :  { %v335_v34 = vpop.permute.xlu0 %334 }
 0x1c6   :  { %v337_v35 = vmul.f32 %v335_v34, %v331_v31 }
 0x236   :  { %v345_v36 = vpop.permute.xlu1 %344 }
 0x237   :  { %v347_v37 = vadd.f32 %v345_v36, %v337_v35 }
 0x239   :  { %1335 = vtanh.f32 %v347_v37 }
 0x243   :  { %v1336_v38 = vpop.eup %1335 }
 0x244   :  { %350 = vrot.lane.b32.xlu1 %v1336_v38, %s1531_s9 }
 0x2b6   :  { %v351_v39 = vpop.permute.xlu1 %350 }
 0x2b7   :  { %v1692_v40 = vmul.f32 %v351_v39, %v331_v31 }
 0x2b9   :  { %v361_v41 = vpack.c.bf16 %v1692_v40, %v1692_v40 }
 0x2bb   :  { %363 = vrot.lane.b32.xlu0 %v361_v41, %s1537_s21 }
 0x32d   :  { %v364_v42 = vpop.permute.xlu0 %363 }
 0x32e   :  { %1239 = vmatmul.mubr.msk.bf16.vlgmr.msra.gmra.mrb[4].mxu1 %vm84_vm0, %v364_v42  ;;  %v1327_v42 = vld [vmem:[#allocation6 + $0x10] sm:$0xff]  }
 0x32f   :  { %1243 = vmatpush3.bf16.msra.mxu1 %v1658_v4  ;;  %1246 = vmatprep.mubr.msk.bf16.mxu1 %vm1536_vm1, %v1535_v0 }
 0x330   :  { %1244 = vmatprep.subr.bf16.mxu1 %v1535_v0  ;;  %1222 = vmatprep.mubr.bf16.mxu0 %v1327_v42 }
 0x333   :  { %1245 = vmatpush3.bf16.msra.mxu1 %v1661_v6 }
 0x334   :  { %1250 = vmatprep.subr.bf16.mxu1 %v1535_v0 }
 0x401   :  { %v402_v44 = vpop.f32.mrb[4].mxu1 }
 0x402   :  { %v408_v45 = vadd.f32 %v402_v44, %v228_v43  ;;  %v1240_v46 = vpop.f32.mrb[5].mxu1  ;;  %v1328_v43 = vld [vmem:[#allocation6 + $0x18] sm:$0xff]  }
 0x403   :  { %v405_v47 = vpop.f32.mrb[6].mxu1  ;;  %1223 = vmatmul.mubr.bf16.gmra.mrb[4].mxu0 %v1328_v43 }
 0x404   :  { %1337 = vtanh.f32 %v408_v45  ;;  %v1241_v48 = vpop.f32.mrb[7].mxu1  ;;  %v409_v50 = vmul.f32 0.5, %v408_v45  ;;  %1270 = vmatprep.mubr.msk.bf16.mxu0 %vm1536_vm1, %v1535_v0 }
 0x406   :  { %1339 = vtanh.f32 %v409_v50 }
 0x40e   :  { %v1338_v49 = vpop.eup %1337 }
 0x40f   :  { %416 = vrot.lane.b32.xlu1 %v1338_v49, %s1531_s9 }
 0x410   :  { %v1340_v51 = vpop.eup %1339 }
 0x411   :  { %v411_v52 = vadd.f32 1.0, %v1340_v51 }
 0x413   :  { %v412_v53 = vmul.f32 0.5, %v411_v52 }
 0x415   :  { %v414_v56 = vmul.f32 %v412_v53, %v347_v37 }
 0x481   :  { %v417_v54 = vpop.permute.xlu1 %416 }
 0x482   :  { %v419_v55 = vmul.f32 %v417_v54, %v412_v53 }
 0x484   :  { %421 = vrot.lane.b32.xlu0 %v419_v55, %s1537_s21 }
 0x4d6   :  { %v1749_v48 = vpop.f32.mrb[4].mxu0 }
 0x4d7   :  { %v240_v49 = vpop.f32.mrb[5].mxu0 }
 0x4d8   :  { %v1751_v50 = vpop.f32.mrb[6].mxu0 }
 0x4d9   :  { %v243_v51 = vpop.f32.mrb[7].mxu0 }
 0x4f6   :  { %v422_v57 = vpop.permute.xlu0 %421 }
 0x4f7   :  { %v424_v58 = vadd.f32 %v422_v57, %v414_v56 }
 0x4f9   :  { %1341 = vtanh.f32 %v424_v58 }
 0x503   :  { %v1342_v59 = vpop.eup %1341 }
 0x504   :  { %427 = vrot.lane.b32.xlu1 %v1342_v59, %s1531_s9 }
 0x576   :  { %v428_v60 = vpop.permute.xlu1 %427 }
 0x577   :  { %v1708_v61 = vmul.f32 %v428_v60, %v412_v53  ;;  %v241_v53 = vadd.f32 %v1681_v19, %v240_v49 }
 0x579   :  { %v439_v62 = vpack.c.bf16 %v1708_v61, %v1708_v61 }
 0x57b   :  { %441 = vrot.lane.b32.xlu0 %v439_v62, %s1537_s21 }
 0x5ed   :  { %v442_v63 = vpop.permute.xlu0 %441 }
 0x5ee   :  { %1247 = vmatmul.mubr.msk.bf16.vlgmr.msra.gmra.mrb[8].mxu1 %vm84_vm0, %v442_v63 }
 0x5ef   :  { %1251 = vmatpush3.bf16.msra.mxu1 %v1658_v4  ;;  %1254 = vmatprep.mubr.msk.bf16.mxu1 %vm1536_vm1, %v1535_v0 }
 0x5f0   :  { %1252 = vmatprep.subr.bf16.mxu1 %v1535_v0 }
 0x5f3   :  { %1253 = vmatpush3.bf16.msra.mxu1 %v1661_v6 }
 0x5f4   :  { %1258 = vmatprep.subr.bf16.mxu1 %v1535_v0 }
 0x6c1   :  { %v480_v2 = vpop.f32.mrb[8].mxu1 }
 0x6c2   :  { %v486_v3 = vadd.f32 %v480_v2, %v233_v1  ;;  %v1248_v5 = vpop.f32.mrb[9].mxu1 }
 0x6c3   :  { %v483_v7 = vpop.f32.mrb[10].mxu1 }
 0x6c4   :  { %1343 = vtanh.f32 %v486_v3  ;;  %v1249_v8 = vpop.f32.mrb[11].mxu1  ;;  %v487_v10 = vmul.f32 0.5, %v486_v3 }
 0x6c6   :  { %1345 = vtanh.f32 %v487_v10 }
 0x6ce   :  { %v1344_v9 = vpop.eup %1343 }
 0x6cf   :  { %494 = vrot.lane.b32.xlu1 %v1344_v9, %s1531_s9 }
 0x6d0   :  { %v1346_v11 = vpop.eup %1345 }
 0x6d1   :  { %v489_v12 = vadd.f32 1.0, %v1346_v11 }
 0x6d3   :  { %v490_v13 = vmul.f32 0.5, %v489_v12 }
 0x6d5   :  { %v492_v16 = vmul.f32 %v490_v13, %v424_v58 }
 0x741   :  { %v495_v14 = vpop.permute.xlu1 %494 }
 0x742   :  { %v497_v15 = vmul.f32 %v495_v14, %v490_v13  ;;  %v244_v14 = vadd.f32 %v1681_v19, %v243_v51 }
 0x744   :  { %499 = vrot.lane.b32.xlu0 %v497_v15, %s1537_s21 }
 0x7b6   :  { %v500_v17 = vpop.permute.xlu0 %499 }
 0x7b7   :  { %v502_v18 = vadd.f32 %v500_v17, %v492_v16 }
 0x7b9   :  { %1347 = vtanh.f32 %v502_v18 }
 0x7c3   :  { %v1348_v20 = vpop.eup %1347 }
 0x7c4   :  { %505 = vrot.lane.b32.xlu1 %v1348_v20, %s1531_s9 }
 0x836   :  { %v506_v21 = vpop.permute.xlu1 %505 }
 0x837   :  { %v1725_v22 = vmul.f32 %v506_v21, %v490_v13 }
 0x839   :  { %v517_v24 = vpack.c.bf16 %v1725_v22, %v1725_v22 }
 0x83b   :  { %519 = vrot.lane.b32.xlu0 %v517_v24, %s1537_s21 }
 0x8ad   :  { %v520_v25 = vpop.permute.xlu0 %519 }
 0x8ae   :  { %1255 = vmatmul.mubr.msk.bf16.vlgmr.msra.gmra.mrb[12].mxu1 %vm84_vm0, %v520_v25 }
 0x8af   :  { %1259 = vmatpush3.bf16.msra.mxu1 %v1658_v4  ;;  %1262 = vmatprep.mubr.msk.bf16.mxu1 %vm1536_vm1, %v1535_v0 }
 0x8b0   :  { %1260 = vmatprep.subr.bf16.mxu1 %v1535_v0 }
 0x8b3   :  { %1261 = vmatpush3.bf16.msra.mxu1 %v1661_v6 }
 0x8b4   :  { %1274 = vmatprep.subr.bf16.mxu1 %v1535_v0 }
 0x981   :  { %v558_v27 = vpop.f32.mrb[12].mxu1 }
 0x982   :  { %v564_v28 = vadd.f32 %v558_v27, %v236_v26  ;;  %v1256_v29 = vpop.f32.mrb[13].mxu1 }
 0x983   :  { %v561_v30 = vpop.f32.mrb[14].mxu1 }
 0x984   :  { %1349 = vtanh.f32 %v564_v28  ;;  %v1257_v31 = vpop.f32.mrb[15].mxu1  ;;  %v565_v33 = vmul.f32 0.5, %v564_v28 }
 0x986   :  { %1351 = vtanh.f32 %v565_v33 }
 0x98e   :  { %v1350_v32 = vpop.eup %1349 }
 0x98f   :  { %572 = vrot.lane.b32.xlu1 %v1350_v32, %s1531_s9 }
 0x990   :  { %v1352_v34 = vpop.eup %1351 }
 0x991   :  { %v567_v35 = vadd.f32 1.0, %v1352_v34 }
 0x993   :  { %v568_v36 = vmul.f32 0.5, %v567_v35  ;;  %v249_v35 = vadd.f32 %v1749_v48, %v1681_v19 }
 0x995   :  { %v570_v39 = vmul.f32 %v568_v36, %v502_v18 }
 0xa01   :  { %v573_v37 = vpop.permute.xlu1 %572 }
 0xa02   :  { %v575_v38 = vmul.f32 %v573_v37, %v568_v36 }
 0xa04   :  { %577 = vrot.lane.b32.xlu0 %v575_v38, %s1537_s21 }
 0xa76   :  { %v578_v23 = vpop.permute.xlu0 %577 }
 0xa77   :  { %v580_v41 = vadd.f32 %v578_v23, %v570_v39 }
 0xa79   :  { %1353 = vtanh.f32 %v580_v41 }
 0xa83   :  { %v1354_v44 = vpop.eup %1353 }
 0xa84   :  { %583 = vrot.lane.b32.xlu1 %v1354_v44, %s1531_s9 }
 0xaf6   :  { %v584_v45 = vpop.permute.xlu1 %583 }
 0xaf7   :  { %v1744_v46 = vmul.f32 %v584_v45, %v568_v36 }
 0xaf9   :  { %v595_v47 = vpack.c.bf16 %v1744_v46, %v1744_v46 }
 0xafb   :  { %597 = vrot.lane.b32.xlu0 %v595_v47, %s1537_s21 }
 0xb6d   :  { %v598_v52 = vpop.permute.xlu0 %597 }
 0xb6e   :  { %1263 = vmatmul.mubr.msk.bf16.vlgmr.msra.gmra.mrb[16].mxu1 %vm84_vm0, %v598_v52 }
 0xb6f   :  { %1275 = vmatpush3.bf16.msra.mxu1 %v1658_v4  ;;  %1278 = vmatprep.mubr.msk.bf16.mxu1 %vm1536_vm1, %v1535_v0 }
 0xb70   :  { %1276 = vmatprep.subr.bf16.mxu1 %v1535_v0 }
 0xb73   :  { %1277 = vmatpush3.bf16.msra.mxu1 %v1661_v6 }
 0xc41   :  { %v636_v54 = vpop.f32.mrb[16].mxu1 }
 0xc42   :  { %v642_v55 = vadd.f32 %v636_v54, %v241_v53  ;;  %v1264_v56 = vpop.f32.mrb[17].mxu1 }
 0xc43   :  { %v639_v57 = vpop.f32.mrb[18].mxu1 }
 0xc44   :  { %1355 = vtanh.f32 %v642_v55  ;;  %v1265_v58 = vpop.f32.mrb[19].mxu1  ;;  %v643_v60 = vmul.f32 0.5, %v642_v55 }
 0xc45   :  { %v252_v58 = vadd.f32 %v1751_v50, %v1681_v19 }
 0xc46   :  { %1357 = vtanh.f32 %v643_v60 }
 0xc4e   :  { %v1356_v59 = vpop.eup %1355 }
 0xc4f   :  { %650 = vrot.lane.b32.xlu1 %v1356_v59, %s1531_s9 }
 0xc50   :  { %v1358_v62 = vpop.eup %1357 }
 0xc51   :  { %v645_v63 = vadd.f32 1.0, %v1358_v62 }
 0xc53   :  { %v646_v1 = vmul.f32 0.5, %v645_v63 }
 0xc55   :  { %v648_v5 = vmul.f32 %v646_v1, %v580_v41 }
 0xcc1   :  { %v651_v2 = vpop.permute.xlu1 %650 }
 0xcc2   :  { %v653_v3 = vmul.f32 %v651_v2, %v646_v1 }
 0xcc4   :  { %655 = vrot.lane.b32.xlu0 %v653_v3, %s1537_s21 }
 0xd36   :  { %v656_v7 = vpop.permute.xlu0 %655 }
 0xd37   :  { %v658_v8 = vadd.f32 %v656_v7, %v648_v5 }
 0xd39   :  { %1359 = vtanh.f32 %v658_v8 }
 0xd43   :  { %v1360_v9 = vpop.eup %1359 }
 0xd44   :  { %661 = vrot.lane.b32.xlu1 %v1360_v9, %s1531_s9 }
 0xdb6   :  { %v662_v10 = vpop.permute.xlu1 %661 }
 0xdb7   :  { %v1763_v11 = vmul.f32 %v662_v10, %v646_v1 }
 0xdb9   :  { %v673_v12 = vpack.c.bf16 %v1763_v11, %v1763_v11 }
 0xdbb   :  { %675 = vrot.lane.b32.xlu0 %v673_v12, %s1537_s21 }
 0xe2d   :  { %v676_v13 = vpop.permute.xlu0 %675 }
 0xe2e   :  { %1271 = vmatmul.mubr.msk.bf16.vlgmr.msra.gmra.mrb[8].mxu0 %vm84_vm0, %v676_v13 }
 0xe2f   :  { %1283 = vmatpush3.bf16.msra.mxu0 %v1658_v4  ;;  %1286 = vmatprep.mubr.msk.bf16.mxu0 %vm1536_vm1, %v1535_v0 }
 0xe30   :  { %1284 = vmatprep.subr.bf16.mxu0 %v1535_v0 }
 0xe33   :  { %1285 = vmatpush3.bf16.msra.mxu0 %v1661_v6 }
 0xf01   :  { %v714_v15 = vpop.f32.mrb[8].mxu0 }
 0xf02   :  { %v720_v16 = vadd.f32 %v714_v15, %v244_v14  ;;  %v1272_v17 = vpop.f32.mrb[9].mxu0 }
 0xf03   :  { %v717_v18 = vpop.f32.mrb[10].mxu0 }
 0xf04   :  { %1361 = vtanh.f32 %v720_v16  ;;  %v1273_v20 = vpop.f32.mrb[11].mxu0  ;;  %v721_v24 = vmul.f32 0.5, %v720_v16 }
 0xf06   :  { %1363 = vtanh.f32 %v721_v24 }
 0xf0e   :  { %v1362_v21 = vpop.eup %1361 }
 0xf0f   :  { %728 = vrot.lane.b32.xlu1 %v1362_v21, %s1531_s9 }
 0xf10   :  { %v1364_v4 = vpop.eup %1363 }
 0xf11   :  { %v723_v25 = vadd.f32 1.0, %v1364_v4 }
 0xf13   :  { %v724_v26 = vmul.f32 0.5, %v723_v25 }
 0xf15   :  { %v726_v6 = vmul.f32 %v724_v26, %v658_v8 }
 0xf81   :  { %v729_v27 = vpop.permute.xlu1 %728 }
 0xf82   :  { %v731_v0 = vmul.f32 %v729_v27, %v724_v26 }
 0xf84   :  { %733 = vrot.lane.b32.xlu0 %v731_v0, %s1537_s21 }
 0xff6   :  { %v734_v28 = vpop.permute.xlu0 %733 }
 0xff7   :  { %v736_v29 = vadd.f32 %v734_v28, %v726_v6 }
 0xff9   :  { %1365 = vtanh.f32 %v736_v29 }
0x1003   :  { %v1366_v30 = vpop.eup %1365 }
0x1004   :  { %739 = vrot.lane.b32.xlu1 %v1366_v30, %s1531_s9 }
0x1076   :  { %v740_v31 = vpop.permute.xlu1 %739 }
0x1077   :  { %v1778_v32 = vmul.f32 %v740_v31, %v724_v26 }
0x1079   :  { %v751_v33 = vpack.c.bf16 %v1778_v32, %v1778_v32 }
0x107b   :  { %753 = vrot.lane.b32.xlu0 %v751_v33, %s1537_s21  ;;  %v1153_v33 = vld [vmem:[%s1872_s5] ss:$0 sm:$0xff]  ;;  %s1538_s5 = smov 96  }
0x10ed   :  { %v754_v34 = vpop.permute.xlu0 %753 }
0x10ee   :  { %1279 = vmatmul.mubr.msk.bf16.vlgmr.msra.gmra.mrb[20].mxu1 %vm84_vm0, %v754_v34 }
0x11c1   :  { %v792_v36 = vpop.f32.mrb[20].mxu1 }
0x11c2   :  { %v798_v37 = vadd.f32 %v792_v36, %v249_v35  ;;  %v1280_v38 = vpop.f32.mrb[21].mxu1 }
0x11c3   :  { %v795_v39 = vpop.f32.mrb[22].mxu1 }
0x11c4   :  { %1367 = vtanh.f32 %v798_v37  ;;  %v1281_v23 = vpop.f32.mrb[23].mxu1  ;;  %v799_v42 = vmul.f32 0.5, %v798_v37 }
0x11c6   :  { %1369 = vtanh.f32 %v799_v42 }
0x11ce   :  { %v1368_v41 = vpop.eup %1367 }
0x11cf   :  { %806 = vrot.lane.b32.xlu1 %v1368_v41, %s1531_s9 }
0x11d0   :  { %v1370_v43 = vpop.eup %1369 }
0x11d1   :  { %v801_v44 = vadd.f32 1.0, %v1370_v43 }
0x11d3   :  { %v802_v45 = vmul.f32 0.5, %v801_v44 }
0x11d5   :  { %v804_v51 = vmul.f32 %v802_v45, %v736_v29 }
0x1241   :  { %v807_v47 = vpop.permute.xlu1 %806 }
0x1242   :  { %v809_v49 = vmul.f32 %v807_v47, %v802_v45 }
0x1244   :  { %811 = vrot.lane.b32.xlu0 %v809_v49, %s1537_s21 }
0x12b6   :  { %v812_v48 = vpop.permute.xlu0 %811 }
0x12b7   :  { %v814_v52 = vadd.f32 %v812_v48, %v804_v51 }
0x12b9   :  { %1371 = vtanh.f32 %v814_v52 }
0x12c3   :  { %v1372_v53 = vpop.eup %1371 }
0x12c4   :  { %817 = vrot.lane.b32.xlu1 %v1372_v53, %s1531_s9 }
0x1336   :  { %v818_v54 = vpop.permute.xlu1 %817 }
0x1337   :  { %v820_v55 = vmul.f32 %v818_v54, %v802_v45 }
0x1339   :  { %v829_v56 = vpack.c.bf16 %v820_v55, %v820_v55 }
0x133b   :  { %831 = vrot.lane.b32.xlu0 %v829_v56, %s1537_s21 }
0x13ad   :  { %v832_v57 = vpop.permute.xlu0 %831 }
0x13ae   :  { %1287 = vmatmul.mubr.msk.bf16.vlgmr.msra.gmra.mrb[12].mxu0 %vm84_vm0, %v832_v57 }
0x1481   :  { %v870_v59 = vpop.f32.mrb[12].mxu0 }
0x1482   :  { %v876_v60 = vadd.f32 %v870_v59, %v252_v58  ;;  %v1288_v62 = vpop.f32.mrb[13].mxu0 }
0x1483   :  { %v873_v63 = vpop.f32.mrb[14].mxu0 }
0x1484   :  { %1373 = vtanh.f32 %v876_v60  ;;  %v1289_v1 = vpop.f32.mrb[15].mxu0  ;;  %v877_v3 = vmul.f32 0.5, %v876_v60 }
0x1486   :  { %1375 = vtanh.f32 %v877_v3 }
0x148e   :  { %v1374_v2 = vpop.eup %1373 }
0x148f   :  { %884 = vrot.lane.b32.xlu1 %v1374_v2, %s1531_s9 }
0x1490   :  { %v1376_v5 = vpop.eup %1375 }
0x1491   :  { %v879_v7 = vadd.f32 1.0, %v1376_v5 }
0x1493   :  { %v880_v8 = vmul.f32 0.5, %v879_v7 }
0x1495   :  { %v882_v19 = vmul.f32 %v880_v8, %v814_v52 }
0x1501   :  { %v885_v9 = vpop.permute.xlu1 %884 }
0x1502   :  { %v887_v10 = vmul.f32 %v885_v9, %v880_v8 }
0x1504   :  { %889 = vrot.lane.b32.xlu0 %v887_v10, %s1537_s21 }
0x1508   :  { %355 = vrot.lane.b32.xlu0 %v1692_v40, %s1537_s21  ;;  %v1329_v40 = vld [vmem:[#allocation12] sm:$0xff]  }
0x1509   :  { %1290 = vmatprep.subr.bf16.mxu1 %v1329_v40 }
0x150a   :  { %1291 = vmatpush3.bf16.msra.mxu1 %v1329_v40 }
0x150c   :  { %510 = vrot.lane.b32.xlu0 %v1725_v22, %s1537_s21 }
0x1510   :  { %666 = vrot.lane.b32.xlu0 %v1763_v11, %s1537_s21  ;;  %v1330_v11 = vld [vmem:[#allocation12 + $0x8] sm:$0xff]  }
0x1511   :  { %1292 = vmatprep.subr.bf16.mxu1 %v1330_v11 }
0x1512   :  { %1293 = vmatpush3.bf16.msra.mxu1 %v1330_v11 }
0x1514   :  { %822 = vrot.lane.b32.xlu0 %v820_v55, %s1537_s21 }
0x1576   :  { %v890_v50 = vpop.permute.xlu0 %889 }
0x1577   :  { %v1802_v12 = vadd.f32 %v890_v50, %v882_v19 }
0x1579   :  { %1377 = vtanh.f32 %v1802_v12 }
0x157a   :  { %v356_v13 = vpop.permute.xlu0 %355 }
0x157b   :  { %358 = vst.msk [vmem:[#allocation3] sm:$0xff] %vm84_vm0, %v356_v13 }
0x157e   :  { %v511_v14 = vpop.permute.xlu0 %510 }
0x157f   :  { %514 = vst.msk [vmem:[#allocation3 + $0x10] sm:$0xff] %vm84_vm0, %v511_v14 }
0x1582   :  { %v667_v22 = vpop.permute.xlu0 %666  ;;  %v911_v4 = vld [vmem:[#allocation3] sm:$0xff] }
0x1583   :  { %v1378_v15 = vpop.eup %1377  ;;  %670 = vst.msk [vmem:[#allocation3 + $0x20] sm:$0xff] %vm84_vm0, %v667_v22 }
0x1584   :  { %895 = vrot.lane.b32.xlu1 %v1378_v15, %s1531_s9 }
0x1586   :  { %v823_v16 = vpop.permute.xlu0 %822 }
0x1587   :  { %826 = vst.msk [vmem:[#allocation3 + $0x30] sm:$0xff] %vm84_vm0, %v823_v16 }
0x1588   :  { %432 = vrot.lane.b32.xlu1 %v1708_v61, %s1537_s21 }
0x158a   :  { %v915_v0 = vld [vmem:[#allocation3 + $0x20] sm:$0xff] }
0x158c   :  { %588 = vrot.lane.b32.xlu1 %v1744_v46, %s1537_s21  ;;  %v913_v46 = vld [vmem:[#allocation3 + $0x10] sm:$0xff] }
0x158e   :  { %v917_v30 = vld [vmem:[#allocation3 + $0x30] sm:$0xff] }
0x1590   :  { %744 = vrot.lane.b32.xlu1 %v1778_v32, %s1537_s21 }
0x15f6   :  { %v896_v17 = vpop.permute.xlu1 %895 }
0x15f7   :  { %v898_v18 = vmul.f32 %v896_v17, %v880_v8 }
0x15f9   :  { %900 = vrot.lane.b32.xlu1 %v898_v18, %s1537_s21 }
0x15fa   :  { %v433_v20 = vpop.permute.xlu1 %432 }
0x15fb   :  { %436 = vst.msk [vmem:[#allocation3 + $0x8] sm:$0xff] %vm84_vm0, %v433_v20 }
0x15fe   :  { %v589_v21 = vpop.permute.xlu1 %588 }
0x15ff   :  { %592 = vst.msk [vmem:[#allocation3 + $0x18] sm:$0xff] %vm84_vm0, %v589_v21 }
0x1602   :  { %v745_v24 = vpop.permute.xlu1 %744  ;;  %v912_v25 = vld [vmem:[#allocation3 + $0x8] sm:$0xff] }
0x1603   :  { %748 = vst.msk [vmem:[#allocation3 + $0x28] sm:$0xff] %vm84_vm0, %v745_v24  ;;  %v919_v61 = vpack.c.bf16 %v912_v25, %v911_v4 }
0x1605   :  { %1294 = vmatprep.mubr.msk.bf16.mxu1 %vm84_vm0, %v919_v61 }
0x1606   :  { %v914_v26 = vld [vmem:[#allocation3 + $0x18] sm:$0xff] }
0x1607   :  { %v920_v27 = vpack.c.bf16 %v914_v26, %v913_v46 }
0x1609   :  { %1295 = vmatmul.mubr.msk.bf16.vlgmr.msra.gmra.mrb[24].mxu1 %vm84_vm0, %v920_v27 }
0x160a   :  { %v916_v6 = vld [vmem:[#allocation3 + $0x28] sm:$0xff] }
0x160b   :  { %v921_v28 = vpack.c.bf16 %v916_v6, %v915_v0 }
0x160d   :  { %1298 = vmatprep.mubr.msk.bf16.mxu1 %vm84_vm0, %v921_v28 }
0x166b   :  { %v901_v29 = vpop.permute.xlu1 %900 }
0x166c   :  { %904 = vst.msk [vmem:[#allocation3 + $0x38] sm:$0xff] %vm84_vm0, %v901_v29  ;;  %905 = vst.msk [vmem:[#allocation4] sm:$0xff] %vm84_vm0, %v901_v29 }
0x1673   :  { %v918_v31 = vld [vmem:[#allocation3 + $0x38] sm:$0xff] }
0x1674   :  { %v922_v32 = vpack.c.bf16 %v918_v31, %v917_v30 }
0x1676   :  { %1299 = vmatmul.mubr.msk.bf16.gmra.mrb[28].mxu1 %vm84_vm0, %v922_v32 }
0x16dc   :  { %v1296_v34 = vpop.f32.mrb[24].mxu1 }
0x16dd   :  { %v992_v35 = vpop.f32.mrb[25].mxu1  ;;  %v1001_v23 = vadd.f32 %v1296_v34, %v1153_v33 }
0x16de   :  { %v993_v36 = vadd.f32 %v1153_v33, %v992_v35  ;;  %v1297_v37 = vpop.f32.mrb[26].mxu1 }
0x16df   :  { %v995_v38 = vpop.f32.mrb[27].mxu1  ;;  %v1004_v41 = vadd.f32 %v1297_v37, %v1153_v33 }
0x16e0   :  { %v996_v39 = vadd.f32 %v1153_v33, %v995_v38  ;;  %1023 = vmax.xlane.f32.xlu0 %v993_v36 }
0x16e2   :  { %1025 = vmax.xlane.f32.xlu1 %v996_v39 }
0x16e4   :  { %1027 = vmax.xlane.f32.xlu0 %v1001_v23 }
0x16e8   :  { %1029 = vmax.xlane.f32.xlu0 %v1004_v41 }
0x1749   :  { %v1300_v42 = vpop.f32.mrb[28].mxu1 }
0x174a   :  { %v1008_v43 = vpop.f32.mrb[29].mxu1  ;;  %v1017_v51 = vadd.f32 %v1300_v42, %v1153_v33 }
0x174b   :  { %v1009_v44 = vadd.f32 %v1153_v33, %v1008_v43  ;;  %v1301_v45 = vpop.f32.mrb[30].mxu1 }
0x174c   :  { %v1011_v47 = vpop.f32.mrb[31].mxu1  ;;  %v1020_v48 = vadd.f32 %v1301_v45, %v1153_v33 }
0x174d   :  { %v1012_v49 = vadd.f32 %v1153_v33, %v1011_v47  ;;  %1031 = vmax.xlane.f32.xlu1 %v1009_v44 }
0x174f   :  { %1033 = vmax.xlane.f32.xlu0 %v1012_v49 }
0x1751   :  { %1035 = vmax.xlane.f32.xlu1 %v1017_v51 }
0x1753   :  { %1037 = vmax.xlane.f32.xlu0 %v1020_v48 }
0x176d   :  { %v1024_v52 = vpop.xlane.xlu0 %1023 }
0x176e   :  { %v1829_v53 = vsub.f32 %v993_v36, %v1024_v52 }
0x176f   :  { %v1026_v54 = vpop.xlane.xlu1 %1025 }
0x1770   :  { %v1047_v55 = vmul.f32 1.442695, %v1829_v53  ;;  %v1832_v56 = vsub.f32 %v996_v39, %v1026_v54 }
0x1771   :  { %v1028_v57 = vpop.xlane.xlu0 %1027 }
0x1772   :  { %1379 = vpow2.f32 %v1047_v55  ;;  %v1049_v58 = vmul.f32 1.442695, %v1832_v56  ;;  %v1041_v59 = vsub.f32 %v1001_v23, %v1028_v57 }
0x1774   :  { %1381 = vpow2.f32 %v1049_v58  ;;  %v1051_v60 = vmul.f32 1.442695, %v1041_v59 }
0x1775   :  { %v1030_v62 = vpop.xlane.xlu0 %1029 }
0x1776   :  { %1383 = vpow2.f32 %v1051_v60  ;;  %v1042_v63 = vsub.f32 %v1004_v41, %v1030_v62 }
0x1778   :  { %v1053_v1 = vmul.f32 1.442695, %v1042_v63 }
0x177a   :  { %1385 = vpow2.f32 %v1053_v1 }
0x177c   :  { %v1380_v2 = vpop.eup %1379 }
0x177d   :  { %1063 = vadd.xlane.f32.xlu1 %v1380_v2 }
0x177e   :  { %v1382_v3 = vpop.eup %1381 }
0x177f   :  { %1065 = vadd.xlane.f32.xlu0 %v1382_v3 }
0x1780   :  { %v1384_v5 = vpop.eup %1383 }
0x1781   :  { %1067 = vadd.xlane.f32.xlu1 %v1384_v5 }
0x1784   :  { %v1386_v7 = vpop.eup %1385 }
0x1785   :  { %1069 = vadd.xlane.f32.xlu0 %v1386_v7 }
0x17da   :  { %v1032_v8 = vpop.xlane.xlu1 %1031 }
0x17db   :  { %v1837_v50 = vsub.f32 %v1009_v44, %v1032_v8 }
0x17dc   :  { %v1034_v9 = vpop.xlane.xlu0 %1033 }
0x17dd   :  { %v1835_v10 = vsub.f32 %v1012_v49, %v1034_v9  ;;  %v1055_v11 = vmul.f32 1.442695, %v1837_v50 }
0x17de   :  { %v1036_v19 = vpop.xlane.xlu1 %1035 }
0x17df   :  { %v1057_v13 = vmul.f32 1.442695, %v1835_v10  ;;  %v1840_v14 = vsub.f32 %v1017_v51, %v1036_v19 }
0x17e0   :  { %v1038_v40 = vpop.xlane.xlu0 %1037 }
0x17e1   :  { %1387 = vpow2.f32 %v1057_v13  ;;  %v1059_v22 = vmul.f32 1.442695, %v1840_v14  ;;  %v1843_v15 = vsub.f32 %v1020_v48, %v1038_v40 }
0x17e3   :  { %1389 = vpow2.f32 %v1059_v22  ;;  %v1061_v16 = vmul.f32 1.442695, %v1843_v15 }
0x17e5   :  { %1391 = vpow2.f32 %v1061_v16 }
0x17e6   :  { %1393 = vpow2.f32 %v1055_v11 }
0x17eb   :  { %v1388_v17 = vpop.eup %1387 }
0x17ec   :  { %1073 = vadd.xlane.f32.xlu0 %v1388_v17 }
0x17ed   :  { %v1390_v18 = vpop.eup %1389 }
0x17ee   :  { %1075 = vadd.xlane.f32.xlu1 %v1390_v18 }
0x17ef   :  { %v1392_v20 = vpop.eup %1391 }
0x17f0   :  { %1077 = vadd.xlane.f32.xlu0 %v1392_v20  ;;  %v1394_v21 = vpop.eup %1393 }
0x17f2   :  { %1071 = vadd.xlane.f32.xlu1 %v1394_v21 }
0x1803   :  { %907 = vrot.lane.b32.xlu1 %v1802_v12, %s1538_s5 }
0x180a   :  { %v1064_v24 = vpop.xlane.xlu1 %1063 }
0x180b   :  { %1395 = vlog2.f32 %v1064_v24 }
0x180c   :  { %v1066_v4 = vpop.xlane.xlu0 %1065 }
0x180d   :  { %1397 = vlog2.f32 %v1066_v4 }
0x180e   :  { %v1068_v25 = vpop.xlane.xlu1 %1067 }
0x180f   :  { %1399 = vlog2.f32 %v1068_v25 }
0x1812   :  { %v1070_v61 = vpop.xlane.xlu0 %1069 }
0x1813   :  { %1401 = vlog2.f32 %v1070_v61 }
0x1815   :  { %v1396_v46 = vpop.eup %1395 }
0x1816   :  { %v1080_v26 = vmul.f32 0.6931472, %v1396_v46 }
0x1817   :  { %v1398_v27 = vpop.eup %1397 }
0x1818   :  { %v1095_v0 = vsub.f32 %v1829_v53, %v1080_v26  ;;  %v1082_v6 = vmul.f32 0.6931472, %v1398_v27 }
0x1819   :  { %v1400_v28 = vpop.eup %1399 }
0x181a   :  { %1103 = vst [vmem:[#allocation14] sm:$0xff] %v1095_v0  ;;  %v1096_v29 = vsub.f32 %v1832_v56, %v1082_v6  ;;  %v1084_v30 = vmul.f32 0.6931472, %v1400_v28 }
0x181c   :  { %1104 = vst [vmem:[#allocation14 + $0x8] sm:$0xff] %v1096_v29  ;;  %v1097_v12 = vsub.f32 %v1041_v59, %v1084_v30 }
0x181d   :  { %v1402_v31 = vpop.eup %1401 }
0x181e   :  { %1105 = vst [vmem:[#allocation14 + $0x10] sm:$0xff] %v1097_v12  ;;  %v1086_v32 = vmul.f32 0.6931472, %v1402_v31 }
0x1820   :  { %v1098_v33 = vsub.f32 %v1042_v63, %v1086_v32 }
0x1822   :  { %1106 = vst [vmem:[#allocation14 + $0x18] sm:$0xff] %v1098_v33 }
0x1879   :  { %v1074_v34 = vpop.xlane.xlu0 %1073 }
0x187a   :  { %1403 = vlog2.f32 %v1074_v34 }
0x187b   :  { %v1076_v35 = vpop.xlane.xlu1 %1075 }
0x187c   :  { %1405 = vlog2.f32 %v1076_v35 }
0x187d   :  { %v1078_v36 = vpop.xlane.xlu0 %1077 }
0x187e   :  { %1407 = vlog2.f32 %v1078_v36 }
0x187f   :  { %v1072_v37 = vpop.xlane.xlu1 %1071 }
0x1880   :  { %1409 = vlog2.f32 %v1072_v37 }
0x1883   :  { %v908_v38 = vpop.permute.xlu1 %907 }
0x1884   :  { %v1404_v39 = vpop.eup %1403  ;;  %910 = vst.msk [vmem:[#allocation5] sm:$0xff] %vm84_vm0, %v908_v38 }
0x1885   :  { %v1090_v23 = vmul.f32 0.6931472, %v1404_v39 }
0x1886   :  { %v1406_v41 = vpop.eup %1405 }
0x1887   :  { %v1100_v42 = vsub.f32 %v1835_v10, %v1090_v23  ;;  %v1092_v43 = vmul.f32 0.6931472, %v1406_v41 }
0x1888   :  { %v1408_v44 = vpop.eup %1407 }
0x1889   :  { %1108 = vst [vmem:[#allocation14 + $0x28] sm:$0xff] %v1100_v42  ;;  %v1101_v45 = vsub.f32 %v1840_v14, %v1092_v43  ;;  %v1094_v47 = vmul.f32 0.6931472, %v1408_v44 }
0x188a   :  { %v1410_v49 = vpop.eup %1409 }
0x188b   :  { %1109 = vst [vmem:[#allocation14 + $0x30] sm:$0xff] %v1101_v45  ;;  %v1102_v51 = vsub.f32 %v1843_v15, %v1094_v47  ;;  %v1088_v48 = vmul.f32 0.6931472, %v1410_v49 }
0x188d   :  { %1110 = vst [vmem:[#allocation14 + $0x38] sm:$0xff] %v1102_v51  ;;  %v1099_v52 = vsub.f32 %v1837_v50, %v1088_v48 }
0x188f   :  { %1107 = vst [vmem:[#allocation14 + $0x20] sm:$0xff] %v1099_v52 }
0x1890   :  { %1510 = shalt.err (!%p1507_p8)
}
0x1891   :  { %s1511_s28 = scalar_lea.hbm %s1873_s6, 1024 }
0x1892   :  { %p1512_p9 = scmp.ne.s32.totalorder %s1873_s6, %s1511_s28  ;;  %p1515_p10 = scmp.lt.u32.totalorder %s1511_s28, %s1873_s6 }
0x1894   :  { %p1517_p11 = pnand %p1515_p10, %p1512_p9 }
0x1896   :  { %1520 = shalt.err (!%p1517_p11)
}
0x1897   :  { %s1540_s11 = smov 128   ;;  %s1541_s0 = smov 8  }
0x1898   :  { %1122 = dma.vmem_to_hbm [thread:$0]  %s1117_s23, 1024, %s1873_s6, [#allocation8], %s1540_s11, %s1540_s11, %s1541_s0  }
0x1899   :  { %1527 = dma.done.wait [#allocation8], 1024  }
0x189a   :  { %1528 = vsyncadd [#allocation8], 4294966272 }
0x189b   :  { %1126 = vsyncpa [#allocation7], 1 }
0x189c   :  { %1127 = vsyncpa [#allocation10], 1 }
0x189d   :  { %1128 = vsyncpa [#allocation13], 1 }
0x189e   :  { %1129 = vsyncpa [#allocation8], 1 }

</bundles_post_ra>
